<compile_context>
chip_gen: v5e
topology: v5e:2x2
jax: 0.10.0
libtpu: 0.0.40
codegen_flags: <defaults>
</compile_context>

<pallas_src>
import functools

import jax
import jax.numpy as jnp
from jax import lax
from jax.scipy.special import erf as _jax_erf
from jax.experimental import pallas as pl
from jax.experimental.pallas import tpu as pltpu

_SQRT_HALF = 0.7071067811865476


def _gelu_erf(h):
    # Exact-erf GELU via Abramowitz & Stegun 7.1.26 (abs err ~1.5e-7).
    # The divide uses the EUP approximate reciprocal + one Newton refinement; exp also
    # lowers to the EUP, so the VALU only sees the short Horner chain.
    z = h * _SQRT_HALF
    sgn = jnp.where(z >= 0.0, 1.0, -1.0)
    za = jnp.abs(z)
    den = 1.0 + 0.3275911 * za
    t = pl.reciprocal(den, approx=True)
    t = t * (2.0 - den * t)                      # one Newton step -> ~f32 accuracy
    poly = ((((1.061405429 * t - 1.453152027) * t + 1.421413741) * t
             - 0.284496736) * t + 0.254829592) * t
    erf = sgn * (1.0 - poly * jnp.exp(-za * za))
    return 0.5 * h * (1.0 + erf)


def _convnext_kernel(x_ref, ds_ref, cond_ref, xk_ref, ck_ref,
                     wd_ref, wc_ref, bp_ref, dww_ref, dwb_ref, nw_ref, nb_ref,
                     w1_ref, b1_ref, w2_ref, b2_ref, g_ref,
                     o_ref, *, dilation):
    f32 = jnp.float32
    x = x_ref[...].astype(f32)                   # (Bb, T, C) channels-last, f32 residual
    Bb, T, C = x.shape
    R = Bb * T
    xk = xk_ref[...].astype(f32)                 # (Bb, T, 1) keep mask for x_masks
    ck = ck_ref[...].astype(f32)                 # (Bb, T, 1) keep mask for cond_masks

    # 1x1 projections (diffusion step + masked condition). MXU LHS follows weight dtype
    # (bf16 in production); accumulation stays f32.
    ds = ds_ref[...].astype(wd_ref.dtype).reshape(R, C)
    cond = (cond_ref[...].astype(f32) * ck).astype(wc_ref.dtype).reshape(R, C)
    h0 = (x.reshape(R, C)
          + jnp.dot(ds, wd_ref[...], preferred_element_type=f32)
          + jnp.dot(cond, wc_ref[...], preferred_element_type=f32)
          + bp_ref[...].astype(f32))
    # x = x.masked_fill(x_masks, 0)
    h0 = h0.reshape(Bb, T, C) * xk

    # Depthwise conv1d (k=7, groups=C, 'same' padding = 3*dilation): pad once, then
    # 7 static slices multiply-accumulated per channel.
    pad = 3 * dilation
    dww = dww_ref[...].astype(f32)               # (7, C)
    zpad = jnp.zeros((Bb, pad, C), f32)
    hp = jnp.concatenate([zpad, h0, zpad], axis=1)          # (Bb, T + 2*pad, C)
    y = hp[:, pad:pad + T, :] * dww[3:4, :]                  # center tap
    for k in range(7):
        if k == 3:
            continue
        off = k * dilation
        y = y + hp[:, off:off + T, :] * dww[k:k + 1, :]

    # LayerNorm over channels (eps=1e-6, biased variance), one-pass moments.
    y2 = y.reshape(R, C) + dwb_ref[...].astype(f32)
    inv_c = 1.0 / C
    mean = jnp.sum(y2, axis=-1, keepdims=True) * inv_c
    msq = jnp.sum(y2 * y2, axis=-1, keepdims=True) * inv_c
    var = jnp.maximum(msq - mean * mean, 0.0)
    yn = (y2 - mean) * lax.rsqrt(var + 1e-6) * nw_ref[...].astype(f32) \
         + nb_ref[...].astype(f32)

    # pwconv1 -> GELU (exact erf form) -> pwconv2
    h = jnp.dot(yn.astype(w1_ref.dtype), w1_ref[...],
                preferred_element_type=f32) + b1_ref[...].astype(f32)
    h = _gelu_erf(h)
    out2 = jnp.dot(h.astype(w2_ref.dtype), w2_ref[...],
                   preferred_element_type=f32) + b2_ref[...].astype(f32)

    # layer scale, residual (unprojected input), final mask
    out2 = out2 * g_ref[...].astype(f32)
    out = (x + out2.reshape(Bb, T, C)) * xk
    o_ref[...] = out.astype(o_ref.dtype)


def convnext_block_tlc(x_tc, cond_tc, ds_tc, x_masks, cond_masks, params, *,
                       dilation=1, bblk=None):
    """Channels-last entry: x_tc/cond_tc/ds_tc are (B, T, C); masks (B, T) bool.

    Activations/output stream in the dtype of `x_tc` (use bf16 in production); matmul
    weights stream in their own dtype (bf16 recommended). Returns (B, T, C).
    """
    B, T, C = x_tc.shape
    H = params["w1"].shape[1]
    # Keep T a multiple of 8 so the (Bb,T,C)<->(Bb*T,C) reshapes are sublane-merge no-ops.
    assert T % 8 == 0, "sequence length T must be a multiple of 8"

    # Keep masks: (B, T, 1) f32, negligible traffic; cond mask is applied in-kernel.
    x_keep = (1.0 - x_masks.astype(jnp.float32))[:, :, None]
    c_keep = (1.0 - cond_masks.astype(jnp.float32))[:, :, None]
    bp = params["bd"] + params["bc"]                              # fused 1x1 biases (1, C)

    act_itemsize = jnp.dtype(x_tc.dtype).itemsize
    # Per batch-row VMEM footprint for one grid step:
    #   double-buffered streamed blocks (x, ds, cond, out + two f32 masks) plus an
    #   estimate of the f32 compute working set (~8 C-wide + 2 H-wide temporaries).
    stream_per_b = T * (4 * C * act_itemsize + 2 * 4)
    interm_per_b = T * (8 * C + 2 * H) * 4
    per_b = 2 * stream_per_b + interm_per_b

    if bblk is None:
        budget = 48 << 20            # keeps a step inside v7x's 64 MiB VMEM; v5e/v6e: 128
        max_bblk = max(1, budget // per_b)
        divisors = [d for d in range(1, B + 1) if B % d == 0]
        fit = [d for d in divisors if d <= max_bblk] or [1]
        want_grid = min(B, 4)        # >= 2 steps per TensorCore on v7x when batch allows
        good = [d for d in fit if B // d >= want_grid]
        bblk = max(good) if good else max(fit)
    assert B % bblk == 0, "batch must be divisible by the batch block"
    grid = (B // bblk,)

    w_args = (params["wd"], params["wc"], bp, params["dw_w"], params["dw_b"],
              params["nw"], params["nb"], params["w1"], params["b1"],
              params["w2"], params["b2"], params["gamma"])
    weight_bytes = sum(int(w.size) * jnp.dtype(w.dtype).itemsize for w in w_args)

    vmem_limit = int(min(64 << 20,
                         max(32 << 20, bblk * per_b + 4 * weight_bytes + (2 << 20))))

    flops = int(B * T * (4 * C * C + 4 * C * H + 30 * C))
    cost = pl.CostEstimate(
        flops=flops,
        transcendentals=int(B * T * H),
        bytes_accessed=int(B * T * (4 * C * act_itemsize + 2 * 4) + weight_bytes))

    def bspec(*shape):
        n = len(shape)
        return pl.BlockSpec((bblk,) + shape, lambda b, n=n: (b,) + (0,) * n)

    def wspec(*shape):
        n = len(shape)
        return pl.BlockSpec(shape, lambda b, n=n: (0,) * n)

    in_specs = [
        bspec(T, C), bspec(T, C), bspec(T, C), bspec(T, 1), bspec(T, 1),
        wspec(C, C), wspec(C, C), wspec(1, C), wspec(7, C), wspec(1, C),
        wspec(1, C), wspec(1, C), wspec(C, H), wspec(1, H), wspec(H, C),
        wspec(1, C), wspec(1, C),
    ]

    return pl.pallas_call(
        functools.partial(_convnext_kernel, dilation=dilation),
        out_shape=jax.ShapeDtypeStruct((B, T, C), x_tc.dtype),
        grid=grid,
        in_specs=in_specs,
        out_specs=pl.BlockSpec((bblk, T, C), lambda b: (b, 0, 0)),
        compiler_params=pltpu.CompilerParams(
            dimension_semantics=("parallel",), vmem_limit_bytes=vmem_limit),
        cost_estimate=cost,
    )(x_tc, ds_tc, cond_tc, x_keep, c_keep,
      params["wd"], params["wc"], bp, params["dw_w"], params["dw_b"],
      params["nw"], params["nb"], params["w1"], params["b1"],
      params["w2"], params["b2"], params["gamma"])


@functools.partial(jax.jit, static_argnames=("dilation", "bblk"))
def convnext_block(x, condition, diffusion_step, x_masks, cond_masks, params, *,
                   dilation=1, bblk=None):
    """PyTorch-style NCT interface: (B, C, T) in/out; masks (B, T) bool.

    The NCT<->TLC transposes fuse with mask prep under jit; prefer convnext_block_tlc in
    channels-last pipelines to skip them entirely.
    """
    out = convnext_block_tlc(
        jnp.transpose(x, (0, 2, 1)),
        jnp.transpose(condition, (0, 2, 1)),
        jnp.transpose(diffusion_step, (0, 2, 1)),
        x_masks, cond_masks, params, dilation=dilation, bblk=bblk)
    return jnp.transpose(out, (0, 2, 1))


def _reference(x, condition, diffusion_step, x_masks, cond_masks, params, *, dilation=1):
    """Pure-JAX f32 reference mirroring the PyTorch forward (NCT interface)."""
    B, C, T = x.shape
    xk = (1.0 - x_masks.astype(jnp.float32))[:, :, None]
    ck = (1.0 - cond_masks.astype(jnp.float32))[:, :, None]
    xt = jnp.transpose(x, (0, 2, 1)).astype(jnp.float32)
    ct = jnp.transpose(condition, (0, 2, 1)).astype(jnp.float32)
    dt = jnp.transpose(diffusion_step, (0, 2, 1)).astype(jnp.float32)
    res = xt
    h = xt + dt @ params["wd"].astype(jnp.float32) + params["bd"]
    h = h + (ct * ck) @ params["wc"].astype(jnp.float32) + params["bc"]
    h = h * xk
    pad = 3 * dilation
    hp = jnp.pad(h, ((0, 0), (pad, pad), (0, 0)))
    y = jnp.zeros_like(h)
    for k in range(7):
        off = k * dilation
        y = y + hp[:, off:off + T, :] * params["dw_w"][k][None, None, :]
    y = y + params["dw_b"]
    mean = y.mean(-1, keepdims=True)
    var = ((y - mean) ** 2).mean(-1, keepdims=True)
    yn = (y - mean) / jnp.sqrt(var + 1e-6) * params["nw"] + params["nb"]
    z = yn @ params["w1"].astype(jnp.float32) + params["b1"]
    z = 0.5 * z * (1.0 + _jax_erf(z * _SQRT_HALF))          # exact GELU
    o = z @ params["w2"].astype(jnp.float32) + params["b2"]
    o = o * params["gamma"]
    o = res + o
    o = o * xk
    return jnp.transpose(o, (0, 2, 1))


if __name__ == "__main__":
    B, C, H, T = 2, 32, 64, 24       # dim=32, intermediate_dim=64, seq=24, batch=2
    dilation = 1

    key = jax.random.PRNGKey(0)
    ks = jax.random.split(key, 16)

    def rnd(k, shape, scale=0.1):
        return (scale * jax.random.normal(k, shape)).astype(jnp.float32)

    # Deterministic synthetic parameters (shapes dictated by the module __init__).
    params = dict(
        dw_w=rnd(ks[0], (7, C)),                 # Conv1d(dim, dim, 7, groups=dim) (C,1,7) -> (7,C)
        dw_b=rnd(ks[1], (1, C)),
        nw=1.0 + rnd(ks[2], (1, C)),             # LayerNorm weight
        nb=rnd(ks[3], (1, C)),                   # LayerNorm bias
        w1=rnd(ks[4], (C, H)),                   # Linear(dim, intermediate).weight.T
        b1=rnd(ks[5], (1, H)),
        w2=rnd(ks[6], (H, C)),                   # Linear(intermediate, dim).weight.T
        b2=rnd(ks[7], (1, C)),
        gamma=jnp.full((1, C), 1e-6, jnp.float32),  # layer_scale_init_value * ones(dim)
        wd=rnd(ks[8], (C, C)),                   # diffusion_step_projection (1x1 conv), transposed
        bd=rnd(ks[9], (1, C)),
        wc=rnd(ks[10], (C, C)),                  # condition_projection (1x1 conv), transposed
        bc=rnd(ks[11], (1, C)),
    )

    x = jax.random.normal(ks[12], (B, C, T), jnp.float32)
    condition = jax.random.normal(ks[13], (B, C, T), jnp.float32)
    diffusion_step = jax.random.normal(ks[14], (B, C, T), jnp.float32)
    t_idx = jnp.arange(T)
    x_masks = t_idx[None, :] >= jnp.array([[T], [T - 4]])      # (B, T) bool
    cond_masks = t_idx[None, :] >= jnp.array([[T - 2], [T]])   # (B, T) bool

    # 1) Tight f32 numerical check (gamma=1 so the MLP branch is not suppressed by 1e-6).
    params_chk = dict(params, gamma=jnp.ones((1, C), jnp.float32))
    out_f32 = jax.block_until_ready(
        convnext_block(x, condition, diffusion_step, x_masks, cond_masks, params_chk,
                       dilation=dilation))
    ref = _reference(x, condition, diffusion_step, x_masks, cond_masks, params_chk,
                     dilation=dilation)
    err = float(jnp.max(jnp.abs(out_f32 - ref)))
    assert out_f32.shape == (B, C, T)
    assert err < 1e-4, f"f32 max abs err {err}"

    # 2) Production config: bf16-streamed activations/output + bf16 MXU weights.
    params_bf16 = dict(params_chk)
    for name in ("wd", "wc", "w1", "w2"):
        params_bf16[name] = params_chk[name].astype(jnp.bfloat16)
    bf16 = jnp.bfloat16
    out_bf16 = jax.block_until_ready(
        convnext_block(x.astype(bf16), condition.astype(bf16), diffusion_step.astype(bf16),
                       x_masks, cond_masks, params_bf16, dilation=dilation))
    assert out_bf16.shape == (B, C, T) and out_bf16.dtype == bf16
    err_bf16 = float(jnp.max(jnp.abs(out_bf16.astype(jnp.float32) - ref)))
    assert err_bf16 < 7.5e-2, f"bf16 max abs err {err_bf16}"

    # 3) Module-default gamma (1e-6) path, just to exercise the default parameters.
    out_def = jax.block_until_ready(
        convnext_block(x, condition, diffusion_step, x_masks, cond_masks, params,
                       dilation=dilation))
    assert out_def.shape == (B, C, T)

    print("KERNEL_OK")
</pallas_src>

<mosaic_0001>
module attributes {stable_mosaic.version = 11 : i64} {
  func.func @_convnext_kernel(%arg0: i32, %arg1: memref<1x24x32xf32, #tpu.memory_space<vmem>>, %arg2: memref<1x24x32xf32, #tpu.memory_space<vmem>>, %arg3: memref<1x24x32xf32, #tpu.memory_space<vmem>>, %arg4: memref<1x24x1xf32, #tpu.memory_space<vmem>>, %arg5: memref<1x24x1xf32, #tpu.memory_space<vmem>>, %arg6: memref<32x32xf32, #tpu.memory_space<vmem>>, %arg7: memref<32x32xf32, #tpu.memory_space<vmem>>, %arg8: memref<1x32xf32, #tpu.memory_space<vmem>>, %arg9: memref<7x32xf32, #tpu.memory_space<vmem>>, %arg10: memref<1x32xf32, #tpu.memory_space<vmem>>, %arg11: memref<1x32xf32, #tpu.memory_space<vmem>>, %arg12: memref<1x32xf32, #tpu.memory_space<vmem>>, %arg13: memref<32x64xf32, #tpu.memory_space<vmem>>, %arg14: memref<1x64xf32, #tpu.memory_space<vmem>>, %arg15: memref<64x32xf32, #tpu.memory_space<vmem>>, %arg16: memref<1x32xf32, #tpu.memory_space<vmem>>, %arg17: memref<1x32xf32, #tpu.memory_space<vmem>>, %arg18: memref<1x24x32xf32, #tpu.memory_space<vmem>>) attributes {dimension_semantics = [#tpu.dimension_semantics<parallel>], iteration_bounds = array<i64: 2>, scalar_prefetch = 0 : i64, scratch_operands = 0 : i64, tpu.core_type = #tpu.core_type<tc>, window_params = [{transform_indices = @transform_0, window_bounds = array<i64: 1, 24, 32>}, {transform_indices = @transform_1, window_bounds = array<i64: 1, 24, 32>}, {transform_indices = @transform_2, window_bounds = array<i64: 1, 24, 32>}, {transform_indices = @transform_3, window_bounds = array<i64: 1, 24, 1>}, {transform_indices = @transform_4, window_bounds = array<i64: 1, 24, 1>}, {pipeline_mode = #tpu.pipeline_mode<synchronous>, transform_indices = @transform_5, window_bounds = array<i64: 32, 32>}, {pipeline_mode = #tpu.pipeline_mode<synchronous>, transform_indices = @transform_6, window_bounds = array<i64: 32, 32>}, {pipeline_mode = #tpu.pipeline_mode<synchronous>, transform_indices = @transform_7, window_bounds = array<i64: 1, 32>}, {pipeline_mode = #tpu.pipeline_mode<synchronous>, transform_indices = @transform_8, window_bounds = array<i64: 7, 32>}, {pipeline_mode = #tpu.pipeline_mode<synchronous>, transform_indices = @transform_9, window_bounds = array<i64: 1, 32>}, {pipeline_mode = #tpu.pipeline_mode<synchronous>, transform_indices = @transform_10, window_bounds = array<i64: 1, 32>}, {pipeline_mode = #tpu.pipeline_mode<synchronous>, transform_indices = @transform_11, window_bounds = array<i64: 1, 32>}, {pipeline_mode = #tpu.pipeline_mode<synchronous>, transform_indices = @transform_12, window_bounds = array<i64: 32, 64>}, {pipeline_mode = #tpu.pipeline_mode<synchronous>, transform_indices = @transform_13, window_bounds = array<i64: 1, 64>}, {pipeline_mode = #tpu.pipeline_mode<synchronous>, transform_indices = @transform_14, window_bounds = array<i64: 64, 32>}, {pipeline_mode = #tpu.pipeline_mode<synchronous>, transform_indices = @transform_15, window_bounds = array<i64: 1, 32>}, {pipeline_mode = #tpu.pipeline_mode<synchronous>, transform_indices = @transform_16, window_bounds = array<i64: 1, 32>}, {transform_indices = @transform_17, window_bounds = array<i64: 1, 24, 32>}]} {
    %c0 = arith.constant 0 : index
    %c0_0 = arith.constant 0 : index
    %c0_1 = arith.constant 0 : index
    %0 = vector.load %arg1[%c0, %c0_0, %c0_1] : memref<1x24x32xf32, #tpu.memory_space<vmem>>, vector<1x24x32xf32>
    %c0_2 = arith.constant 0 : index
    %c0_3 = arith.constant 0 : index
    %c0_4 = arith.constant 0 : index
    %1 = vector.load %arg4[%c0_2, %c0_3, %c0_4] : memref<1x24x1xf32, #tpu.memory_space<vmem>>, vector<1x24x1xf32>
    %c0_5 = arith.constant 0 : index
    %c0_6 = arith.constant 0 : index
    %c0_7 = arith.constant 0 : index
    %2 = vector.load %arg5[%c0_5, %c0_6, %c0_7] : memref<1x24x1xf32, #tpu.memory_space<vmem>>, vector<1x24x1xf32>
    %c0_8 = arith.constant 0 : index
    %c0_9 = arith.constant 0 : index
    %c0_10 = arith.constant 0 : index
    %3 = vector.load %arg2[%c0_8, %c0_9, %c0_10] : memref<1x24x32xf32, #tpu.memory_space<vmem>>, vector<1x24x32xf32>
    %4 = vector.shape_cast %3 : vector<1x24x32xf32> to vector<24x32xf32>
    %c0_11 = arith.constant 0 : index
    %c0_12 = arith.constant 0 : index
    %c0_13 = arith.constant 0 : index
    %5 = vector.load %arg3[%c0_11, %c0_12, %c0_13] : memref<1x24x32xf32, #tpu.memory_space<vmem>>, vector<1x24x32xf32>
    %6 = vector.broadcast %2 : vector<1x24x1xf32> to vector<1x24x32xf32>
    %7 = arith.mulf %5, %6 : vector<1x24x32xf32>
    %8 = vector.shape_cast %7 : vector<1x24x32xf32> to vector<24x32xf32>
    %9 = vector.shape_cast %0 : vector<1x24x32xf32> to vector<24x32xf32>
    %c0_14 = arith.constant 0 : index
    %c0_15 = arith.constant 0 : index
    %10 = vector.load %arg6[%c0_14, %c0_15] : memref<32x32xf32, #tpu.memory_space<vmem>>, vector<32x32xf32>
    %cst = arith.constant dense<0.000000e+00> : vector<24x32xf32>
    %11 = tpu.matmul %4, %10, %cst {dimension_numbers = #tpu.dot_dimension_numbers<[1], [0], [0], [1], [0, 0, 1, 1], [], []>} : vector<24x32xf32>, vector<32x32xf32>, vector<24x32xf32> -> vector<24x32xf32>
    %12 = arith.addf %9, %11 : vector<24x32xf32>
    %c0_16 = arith.constant 0 : index
    %c0_17 = arith.constant 0 : index
    %13 = vector.load %arg7[%c0_16, %c0_17] : memref<32x32xf32, #tpu.memory_space<vmem>>, vector<32x32xf32>
    %cst_18 = arith.constant dense<0.000000e+00> : vector<24x32xf32>
    %14 = tpu.matmul %8, %13, %cst_18 {dimension_numbers = #tpu.dot_dimension_numbers<[1], [0], [0], [1], [0, 0, 1, 1], [], []>} : vector<24x32xf32>, vector<32x32xf32>, vector<24x32xf32> -> vector<24x32xf32>
    %15 = arith.addf %12, %14 : vector<24x32xf32>
    %c0_19 = arith.constant 0 : index
    %c0_20 = arith.constant 0 : index
    %16 = vector.load %arg8[%c0_19, %c0_20] : memref<1x32xf32, #tpu.memory_space<vmem>>, vector<1x32xf32>
    %17 = vector.broadcast %16 : vector<1x32xf32> to vector<24x32xf32>
    %18 = arith.addf %15, %17 : vector<24x32xf32>
    %19 = vector.shape_cast %18 : vector<24x32xf32> to vector<1x24x32xf32>
    %20 = vector.broadcast %1 : vector<1x24x1xf32> to vector<1x24x32xf32>
    %21 = arith.mulf %19, %20 : vector<1x24x32xf32>
    %c0_21 = arith.constant 0 : index
    %c0_22 = arith.constant 0 : index
    %22 = vector.load %arg9[%c0_21, %c0_22] : memref<7x32xf32, #tpu.memory_space<vmem>>, vector<7x32xf32>
    %cst_23 = arith.constant 0.000000e+00 : f32
    %23 = vector.broadcast %cst_23 : f32 to vector<1x3x32xf32>
    %24 = tpu.concatenate %23, %21, %23 in 1 : vector<1x3x32xf32>, vector<1x24x32xf32>, vector<1x3x32xf32> -> vector<1x30x32xf32>
    %25 = vector.extract_strided_slice %24 {offsets = [0, 3, 0], sizes = [1, 24, 32], strides = [1, 1, 1]} : vector<1x30x32xf32> to vector<1x24x32xf32>
    %26 = vector.extract_strided_slice %22 {offsets = [3, 0], sizes = [1, 32], strides = [1, 1]} : vector<7x32xf32> to vector<1x32xf32>
    %27 = vector.shape_cast %26 : vector<1x32xf32> to vector<1x1x32xf32>
    %28 = vector.broadcast %27 : vector<1x1x32xf32> to vector<1x24x32xf32>
    %29 = arith.mulf %25, %28 : vector<1x24x32xf32>
    %30 = vector.extract_strided_slice %24 {offsets = [0, 0, 0], sizes = [1, 24, 32], strides = [1, 1, 1]} : vector<1x30x32xf32> to vector<1x24x32xf32>
    %31 = vector.extract_strided_slice %22 {offsets = [0, 0], sizes = [1, 32], strides = [1, 1]} : vector<7x32xf32> to vector<1x32xf32>
    %32 = vector.shape_cast %31 : vector<1x32xf32> to vector<1x1x32xf32>
    %33 = vector.broadcast %32 : vector<1x1x32xf32> to vector<1x24x32xf32>
    %34 = arith.mulf %30, %33 : vector<1x24x32xf32>
    %35 = arith.addf %29, %34 : vector<1x24x32xf32>
    %36 = vector.extract_strided_slice %24 {offsets = [0, 1, 0], sizes = [1, 24, 32], strides = [1, 1, 1]} : vector<1x30x32xf32> to vector<1x24x32xf32>
    %37 = vector.extract_strided_slice %22 {offsets = [1, 0], sizes = [1, 32], strides = [1, 1]} : vector<7x32xf32> to vector<1x32xf32>
    %38 = vector.shape_cast %37 : vector<1x32xf32> to vector<1x1x32xf32>
    %39 = vector.broadcast %38 : vector<1x1x32xf32> to vector<1x24x32xf32>
    %40 = arith.mulf %36, %39 : vector<1x24x32xf32>
    %41 = arith.addf %35, %40 : vector<1x24x32xf32>
    %42 = vector.extract_strided_slice %24 {offsets = [0, 2, 0], sizes = [1, 24, 32], strides = [1, 1, 1]} : vector<1x30x32xf32> to vector<1x24x32xf32>
    %43 = vector.extract_strided_slice %22 {offsets = [2, 0], sizes = [1, 32], strides = [1, 1]} : vector<7x32xf32> to vector<1x32xf32>
    %44 = vector.shape_cast %43 : vector<1x32xf32> to vector<1x1x32xf32>
    %45 = vector.broadcast %44 : vector<1x1x32xf32> to vector<1x24x32xf32>
    %46 = arith.mulf %42, %45 : vector<1x24x32xf32>
    %47 = arith.addf %41, %46 : vector<1x24x32xf32>
    %48 = vector.extract_strided_slice %24 {offsets = [0, 4, 0], sizes = [1, 24, 32], strides = [1, 1, 1]} : vector<1x30x32xf32> to vector<1x24x32xf32>
    %49 = vector.extract_strided_slice %22 {offsets = [4, 0], sizes = [1, 32], strides = [1, 1]} : vector<7x32xf32> to vector<1x32xf32>
    %50 = vector.shape_cast %49 : vector<1x32xf32> to vector<1x1x32xf32>
    %51 = vector.broadcast %50 : vector<1x1x32xf32> to vector<1x24x32xf32>
    %52 = arith.mulf %48, %51 : vector<1x24x32xf32>
    %53 = arith.addf %47, %52 : vector<1x24x32xf32>
    %54 = vector.extract_strided_slice %24 {offsets = [0, 5, 0], sizes = [1, 24, 32], strides = [1, 1, 1]} : vector<1x30x32xf32> to vector<1x24x32xf32>
    %55 = vector.extract_strided_slice %22 {offsets = [5, 0], sizes = [1, 32], strides = [1, 1]} : vector<7x32xf32> to vector<1x32xf32>
    %56 = vector.shape_cast %55 : vector<1x32xf32> to vector<1x1x32xf32>
    %57 = vector.broadcast %56 : vector<1x1x32xf32> to vector<1x24x32xf32>
    %58 = arith.mulf %54, %57 : vector<1x24x32xf32>
    %59 = arith.addf %53, %58 : vector<1x24x32xf32>
    %60 = vector.extract_strided_slice %24 {offsets = [0, 6, 0], sizes = [1, 24, 32], strides = [1, 1, 1]} : vector<1x30x32xf32> to vector<1x24x32xf32>
    %61 = vector.extract_strided_slice %22 {offsets = [6, 0], sizes = [1, 32], strides = [1, 1]} : vector<7x32xf32> to vector<1x32xf32>
    %62 = vector.shape_cast %61 : vector<1x32xf32> to vector<1x1x32xf32>
    %63 = vector.broadcast %62 : vector<1x1x32xf32> to vector<1x24x32xf32>
    %64 = arith.mulf %60, %63 : vector<1x24x32xf32>
    %65 = arith.addf %59, %64 : vector<1x24x32xf32>
    %66 = vector.shape_cast %65 : vector<1x24x32xf32> to vector<24x32xf32>
    %c0_24 = arith.constant 0 : index
    %c0_25 = arith.constant 0 : index
    %67 = vector.load %arg10[%c0_24, %c0_25] : memref<1x32xf32, #tpu.memory_space<vmem>>, vector<1x32xf32>
    %68 = vector.broadcast %67 : vector<1x32xf32> to vector<24x32xf32>
    %69 = arith.addf %66, %68 : vector<24x32xf32>
    %cst_26 = arith.constant dense<0.000000e+00> : vector<24xf32>
    %70 = vector.multi_reduction <add>, %69, %cst_26 [1] : vector<24x32xf32> to vector<24xf32>
    %71 = vector.shape_cast %70 : vector<24xf32> to vector<24x1xf32>
    %cst_27 = arith.constant 3.125000e-02 : f32
    %72 = vector.broadcast %cst_27 : f32 to vector<24x1xf32>
    %73 = arith.mulf %71, %72 : vector<24x1xf32>
    %74 = arith.mulf %69, %69 : vector<24x32xf32>
    %cst_28 = arith.constant dense<0.000000e+00> : vector<24xf32>
    %75 = vector.multi_reduction <add>, %74, %cst_28 [1] : vector<24x32xf32> to vector<24xf32>
    %76 = vector.shape_cast %75 : vector<24xf32> to vector<24x1xf32>
    %cst_29 = arith.constant 3.125000e-02 : f32
    %77 = vector.broadcast %cst_29 : f32 to vector<24x1xf32>
    %78 = arith.mulf %76, %77 : vector<24x1xf32>
    %79 = arith.mulf %73, %73 : vector<24x1xf32>
    %80 = arith.subf %78, %79 : vector<24x1xf32>
    %cst_30 = arith.constant 0.000000e+00 : f32
    %81 = vector.broadcast %cst_30 : f32 to vector<24x1xf32>
    %82 = arith.maximumf %80, %81 : vector<24x1xf32>
    %83 = vector.broadcast %73 : vector<24x1xf32> to vector<24x32xf32>
    %84 = arith.subf %69, %83 : vector<24x32xf32>
    %cst_31 = arith.constant 9.99999997E-7 : f32
    %85 = vector.broadcast %cst_31 : f32 to vector<24x1xf32>
    %86 = arith.addf %82, %85 : vector<24x1xf32>
    %87 = math.rsqrt %86 : vector<24x1xf32>
    %88 = vector.broadcast %87 : vector<24x1xf32> to vector<24x32xf32>
    %89 = arith.mulf %84, %88 : vector<24x32xf32>
    %c0_32 = arith.constant 0 : index
    %c0_33 = arith.constant 0 : index
    %90 = vector.load %arg11[%c0_32, %c0_33] : memref<1x32xf32, #tpu.memory_space<vmem>>, vector<1x32xf32>
    %91 = vector.broadcast %90 : vector<1x32xf32> to vector<24x32xf32>
    %92 = arith.mulf %89, %91 : vector<24x32xf32>
    %c0_34 = arith.constant 0 : index
    %c0_35 = arith.constant 0 : index
    %93 = vector.load %arg12[%c0_34, %c0_35] : memref<1x32xf32, #tpu.memory_space<vmem>>, vector<1x32xf32>
    %94 = vector.broadcast %93 : vector<1x32xf32> to vector<24x32xf32>
    %95 = arith.addf %92, %94 : vector<24x32xf32>
    %c0_36 = arith.constant 0 : index
    %c0_37 = arith.constant 0 : index
    %96 = vector.load %arg13[%c0_36, %c0_37] : memref<32x64xf32, #tpu.memory_space<vmem>>, vector<32x64xf32>
    %cst_38 = arith.constant dense<0.000000e+00> : vector<24x64xf32>
    %97 = tpu.matmul %95, %96, %cst_38 {dimension_numbers = #tpu.dot_dimension_numbers<[1], [0], [0], [1], [0, 0, 1, 1], [], []>} : vector<24x32xf32>, vector<32x64xf32>, vector<24x64xf32> -> vector<24x64xf32>
    %c0_39 = arith.constant 0 : index
    %c0_40 = arith.constant 0 : index
    %98 = vector.load %arg14[%c0_39, %c0_40] : memref<1x64xf32, #tpu.memory_space<vmem>>, vector<1x64xf32>
    %99 = vector.broadcast %98 : vector<1x64xf32> to vector<24x64xf32>
    %100 = arith.addf %97, %99 : vector<24x64xf32>
    %cst_41 = arith.constant 0.707106769 : f32
    %101 = vector.broadcast %cst_41 : f32 to vector<24x64xf32>
    %102 = arith.mulf %100, %101 : vector<24x64xf32>
    %cst_42 = arith.constant 0.000000e+00 : f32
    %103 = vector.broadcast %cst_42 : f32 to vector<24x64xf32>
    %104 = arith.cmpf oge, %102, %103 : vector<24x64xf32>
    %cst_43 = arith.constant 1.000000e+00 : f32
    %cst_44 = arith.constant -1.000000e+00 : f32
    %105 = vector.broadcast %cst_43 : f32 to vector<24x64xf32>
    %106 = vector.broadcast %cst_44 : f32 to vector<24x64xf32>
    %107 = arith.select %104, %105, %106 : vector<24x64xi1>, vector<24x64xf32>
    %108 = math.absf %102 : vector<24x64xf32>
    %cst_45 = arith.constant 0.327591091 : f32
    %109 = vector.broadcast %cst_45 : f32 to vector<24x64xf32>
    %110 = arith.mulf %109, %108 : vector<24x64xf32>
    %cst_46 = arith.constant 1.000000e+00 : f32
    %111 = vector.broadcast %cst_46 : f32 to vector<24x64xf32>
    %112 = arith.addf %111, %110 : vector<24x64xf32>
    %113 = tpu.reciprocal %112 {approx = true} : vector<24x64xf32> -> vector<24x64xf32>
    %114 = arith.mulf %112, %113 : vector<24x64xf32>
    %cst_47 = arith.constant 2.000000e+00 : f32
    %115 = vector.broadcast %cst_47 : f32 to vector<24x64xf32>
    %116 = arith.subf %115, %114 : vector<24x64xf32>
    %117 = arith.mulf %113, %116 : vector<24x64xf32>
    %cst_48 = arith.constant 1.06140542 : f32
    %118 = vector.broadcast %cst_48 : f32 to vector<24x64xf32>
    %119 = arith.mulf %118, %117 : vector<24x64xf32>
    %cst_49 = arith.constant 1.45315206 : f32
    %120 = vector.broadcast %cst_49 : f32 to vector<24x64xf32>
    %121 = arith.subf %119, %120 : vector<24x64xf32>
    %122 = arith.mulf %121, %117 : vector<24x64xf32>
    %cst_50 = arith.constant 1.42141378 : f32
    %123 = vector.broadcast %cst_50 : f32 to vector<24x64xf32>
    %124 = arith.addf %122, %123 : vector<24x64xf32>
    %125 = arith.mulf %124, %117 : vector<24x64xf32>
    %cst_51 = arith.constant 0.284496725 : f32
    %126 = vector.broadcast %cst_51 : f32 to vector<24x64xf32>
    %127 = arith.subf %125, %126 : vector<24x64xf32>
    %128 = arith.mulf %127, %117 : vector<24x64xf32>
    %cst_52 = arith.constant 0.254829586 : f32
    %129 = vector.broadcast %cst_52 : f32 to vector<24x64xf32>
    %130 = arith.addf %128, %129 : vector<24x64xf32>
    %131 = arith.mulf %130, %117 : vector<24x64xf32>
    %cst_53 = arith.constant 0.000000e+00 : f32
    %132 = vector.broadcast %cst_53 : f32 to vector<24x64xf32>
    %133 = arith.subf %132, %108 : vector<24x64xf32>
    %134 = arith.mulf %133, %108 : vector<24x64xf32>
    %135 = math.exp %134 : vector<24x64xf32>
    %136 = arith.mulf %131, %135 : vector<24x64xf32>
    %cst_54 = arith.constant 1.000000e+00 : f32
    %137 = vector.broadcast %cst_54 : f32 to vector<24x64xf32>
    %138 = arith.subf %137, %136 : vector<24x64xf32>
    %139 = arith.mulf %107, %138 : vector<24x64xf32>
    %cst_55 = arith.constant 5.000000e-01 : f32
    %140 = vector.broadcast %cst_55 : f32 to vector<24x64xf32>
    %141 = arith.mulf %140, %100 : vector<24x64xf32>
    %cst_56 = arith.constant 1.000000e+00 : f32
    %142 = vector.broadcast %cst_56 : f32 to vector<24x64xf32>
    %143 = arith.addf %142, %139 : vector<24x64xf32>
    %144 = arith.mulf %141, %143 : vector<24x64xf32>
    %c0_57 = arith.constant 0 : index
    %c0_58 = arith.constant 0 : index
    %145 = vector.load %arg15[%c0_57, %c0_58] : memref<64x32xf32, #tpu.memory_space<vmem>>, vector<64x32xf32>
    %cst_59 = arith.constant dense<0.000000e+00> : vector<24x32xf32>
    %146 = tpu.matmul %144, %145, %cst_59 {dimension_numbers = #tpu.dot_dimension_numbers<[1], [0], [0], [1], [0, 0, 1, 1], [], []>} : vector<24x64xf32>, vector<64x32xf32>, vector<24x32xf32> -> vector<24x32xf32>
    %c0_60 = arith.constant 0 : index
    %c0_61 = arith.constant 0 : index
    %147 = vector.load %arg16[%c0_60, %c0_61] : memref<1x32xf32, #tpu.memory_space<vmem>>, vector<1x32xf32>
    %148 = vector.broadcast %147 : vector<1x32xf32> to vector<24x32xf32>
    %149 = arith.addf %146, %148 : vector<24x32xf32>
    %c0_62 = arith.constant 0 : index
    %c0_63 = arith.constant 0 : index
    %150 = vector.load %arg17[%c0_62, %c0_63] : memref<1x32xf32, #tpu.memory_space<vmem>>, vector<1x32xf32>
    %151 = vector.broadcast %150 : vector<1x32xf32> to vector<24x32xf32>
    %152 = arith.mulf %149, %151 : vector<24x32xf32>
    %153 = vector.shape_cast %152 : vector<24x32xf32> to vector<1x24x32xf32>
    %154 = arith.addf %0, %153 : vector<1x24x32xf32>
    %155 = vector.broadcast %1 : vector<1x24x1xf32> to vector<1x24x32xf32>
    %156 = arith.mulf %154, %155 : vector<1x24x32xf32>
    %c0_64 = arith.constant 0 : index
    %c0_65 = arith.constant 0 : index
    %c0_66 = arith.constant 0 : index
    %157 = vector.load %arg18[%c0_64, %c0_65, %c0_66] : memref<1x24x32xf32, #tpu.memory_space<vmem>>, vector<1x24x32xf32>
    tpu.vector_store %arg18[%c0_64, %c0_65, %c0_66], %156 {strides = array<i32>} : memref<1x24x32xf32, #tpu.memory_space<vmem>>, vector<1x24x32xf32>,
    return
  }
  func.func @transform_0(%arg0: i32) -> (i32, i32, i32) {
    %c0_i32 = arith.constant 0 : i32
    %c0_i32_0 = arith.constant 0 : i32
    %c0_i32_1 = arith.constant 0 : i32
    return %arg0, %c0_i32, %c0_i32_0 : i32, i32, i32
  }
  func.func @transform_1(%arg0: i32) -> (i32, i32, i32) {
    %c0_i32 = arith.constant 0 : i32
    %c0_i32_0 = arith.constant 0 : i32
    %c0_i32_1 = arith.constant 0 : i32
    return %arg0, %c0_i32, %c0_i32_0 : i32, i32, i32
  }
  func.func @transform_2(%arg0: i32) -> (i32, i32, i32) {
    %c0_i32 = arith.constant 0 : i32
    %c0_i32_0 = arith.constant 0 : i32
    %c0_i32_1 = arith.constant 0 : i32
    return %arg0, %c0_i32, %c0_i32_0 : i32, i32, i32
  }
  func.func @transform_3(%arg0: i32) -> (i32, i32, i32) {
    %c0_i32 = arith.constant 0 : i32
    %c0_i32_0 = arith.constant 0 : i32
    %c0_i32_1 = arith.constant 0 : i32
    return %arg0, %c0_i32, %c0_i32_0 : i32, i32, i32
  }
  func.func @transform_4(%arg0: i32) -> (i32, i32, i32) {
    %c0_i32 = arith.constant 0 : i32
    %c0_i32_0 = arith.constant 0 : i32
    %c0_i32_1 = arith.constant 0 : i32
    return %arg0, %c0_i32, %c0_i32_0 : i32, i32, i32
  }
  func.func @transform_5(%arg0: i32) -> (i32, i32) {
    %c0_i32 = arith.constant 0 : i32
    %c0_i32_0 = arith.constant 0 : i32
    %c0_i32_1 = arith.constant 0 : i32
    return %c0_i32, %c0_i32_0 : i32, i32
  }
  func.func @transform_6(%arg0: i32) -> (i32, i32) {
    %c0_i32 = arith.constant 0 : i32
    %c0_i32_0 = arith.constant 0 : i32
    %c0_i32_1 = arith.constant 0 : i32
    return %c0_i32, %c0_i32_0 : i32, i32
  }
  func.func @transform_7(%arg0: i32) -> (i32, i32) {
    %c0_i32 = arith.constant 0 : i32
    %c0_i32_0 = arith.constant 0 : i32
    %c0_i32_1 = arith.constant 0 : i32
    return %c0_i32, %c0_i32_0 : i32, i32
  }
  func.func @transform_8(%arg0: i32) -> (i32, i32) {
    %c0_i32 = arith.constant 0 : i32
    %c0_i32_0 = arith.constant 0 : i32
    %c0_i32_1 = arith.constant 0 : i32
    return %c0_i32, %c0_i32_0 : i32, i32
  }
  func.func @transform_9(%arg0: i32) -> (i32, i32) {
    %c0_i32 = arith.constant 0 : i32
    %c0_i32_0 = arith.constant 0 : i32
    %c0_i32_1 = arith.constant 0 : i32
    return %c0_i32, %c0_i32_0 : i32, i32
  }
  func.func @transform_10(%arg0: i32) -> (i32, i32) {
    %c0_i32 = arith.constant 0 : i32
    %c0_i32_0 = arith.constant 0 : i32
    %c0_i32_1 = arith.constant 0 : i32
    return %c0_i32, %c0_i32_0 : i32, i32
  }
  func.func @transform_11(%arg0: i32) -> (i32, i32) {
    %c0_i32 = arith.constant 0 : i32
    %c0_i32_0 = arith.constant 0 : i32
    %c0_i32_1 = arith.constant 0 : i32
    return %c0_i32, %c0_i32_0 : i32, i32
  }
  func.func @transform_12(%arg0: i32) -> (i32, i32) {
    %c0_i32 = arith.constant 0 : i32
    %c0_i32_0 = arith.constant 0 : i32
    %c0_i32_1 = arith.constant 0 : i32
    return %c0_i32, %c0_i32_0 : i32, i32
  }
  func.func @transform_13(%arg0: i32) -> (i32, i32) {
    %c0_i32 = arith.constant 0 : i32
    %c0_i32_0 = arith.constant 0 : i32
    %c0_i32_1 = arith.constant 0 : i32
    return %c0_i32, %c0_i32_0 : i32, i32
  }
  func.func @transform_14(%arg0: i32) -> (i32, i32) {
    %c0_i32 = arith.constant 0 : i32
    %c0_i32_0 = arith.constant 0 : i32
    %c0_i32_1 = arith.constant 0 : i32
    return %c0_i32, %c0_i32_0 : i32, i32
  }
  func.func @transform_15(%arg0: i32) -> (i32, i32) {
    %c0_i32 = arith.constant 0 : i32
    %c0_i32_0 = arith.constant 0 : i32
    %c0_i32_1 = arith.constant 0 : i32
    return %c0_i32, %c0_i32_0 : i32, i32
  }
  func.func @transform_16(%arg0: i32) -> (i32, i32) {
    %c0_i32 = arith.constant 0 : i32
    %c0_i32_0 = arith.constant 0 : i32
    %c0_i32_1 = arith.constant 0 : i32
    return %c0_i32, %c0_i32_0 : i32, i32
  }
  func.func @transform_17(%arg0: i32) -> (i32, i32, i32) {
    %c0_i32 = arith.constant 0 : i32
    %c0_i32_0 = arith.constant 0 : i32
    %c0_i32_1 = arith.constant 0 : i32
    return %arg0, %c0_i32, %c0_i32_0 : i32, i32, i32
  }
}

</mosaic_0001>

<bundles_post_ra>
// kernel: convnext_block.1
= control target key start
LH: loop header
LB: loop body
LE: loop exit
PB: predicated region body
PF: predicated region fallthrough
CT: control target
= control target key end

     0   :  { %s2418_s0 = inlined_call_operand.vmem [shape: f32[2,24,32], index: 0, kind: input, shape index: {}]   ;;  %s2419_s1 = inlined_call_operand.vmem [shape: f32[2,24,32], index: 1, kind: input, shape index: {}]   ;;  %s2420_s2 = inlined_call_operand.vmem [shape: f32[2,24,32], index: 2, kind: input, shape index: {}]   ;;  %s2421_s3 = inlined_call_operand.vmem [shape: f32[2,24,1], index: 3, kind: input, shape index: {}]   ;;  %s2422_s4 = inlined_call_operand.vmem [shape: f32[2,24,1], index: 4, kind: input, shape index: {}]   ;;  %s2423_s5 = inlined_call_operand.vmem [shape: f32[32,32], index: 5, kind: input, shape index: {}]   ;;  %s2424_s6 = inlined_call_operand.vmem [shape: f32[32,32], index: 6, kind: input, shape index: {}]   ;;  %s2425_s7 = inlined_call_operand.vmem [shape: f32[1,32], index: 7, kind: input, shape index: {}]   ;;  %s2426_s8 = inlined_call_operand.vmem [shape: f32[7,32], index: 8, kind: input, shape index: {}]   ;;  %s2427_s9 = inlined_call_operand.hbm [shape: f32[1,32], index: 9, kind: input, shape index: {}]   ;;  %s2428_s10 = inlined_call_operand.vmem [shape: f32[1,32], index: 10, kind: input, shape index: {}]   ;;  %s2429_s11 = inlined_call_operand.vmem [shape: f32[1,32], index: 11, kind: input, shape index: {}]   ;;  %s2430_s12 = inlined_call_operand.hbm [shape: f32[32,64], index: 12, kind: input, shape index: {}]   ;;  %s2431_s13 = inlined_call_operand.hbm [shape: f32[1,64], index: 13, kind: input, shape index: {}]   ;;  %s2432_s14 = inlined_call_operand.vmem [shape: f32[64,32], index: 14, kind: input, shape index: {}]   ;;  %s2433_s15 = inlined_call_operand.hbm [shape: f32[1,32], index: 15, kind: input, shape index: {}]   ;;  %s2434_s16 = inlined_call_operand.hbm [shape: f32[1,32], index: 16, kind: input, shape index: {}]   ;;  %s2435_s17 = inlined_call_operand.hbm [shape: f32[2,24,32], index: 17, kind: output, shape index: {}]  }
   0x1   :  { %2446 = sst [smem:[#allocation24_spill]] %s2418_s0 }
   0x2   :  { %2447 = sst [smem:[#allocation25_spill]] %s2419_s1 }
   0x3   :  { %2448 = sst [smem:[#allocation26_spill]] %s2430_s12 }
   0x4   :  { %2449 = sst [smem:[#allocation27_spill]] %s2433_s15 }
   0x5   :  { %2450 = sst [smem:[#allocation28_spill]] %s2435_s17 }
   0x6   :  { %22 = vsyncpa [#allocation3], 0 }
   0x7   :  { %23 = vsyncpa [#allocation6], 0 }
   0x8   :  { %24 = vsyncpa [#allocation9], 0 }
   0x9   :  { %25 = vsyncpa [#allocation4], 0 }
   0xa   :  { %27 = vsyncpa [#allocation4 + $0x1], 0  ;;  %s2011_s24 = smov 0   ;;  %s2013_s25 = smov 0  }
   0xb   :  { %s2015_s26 = smov 0   ;;  %s2017_s27 = smov 0  }
   0xc LB: > { %2451 = sst [smem:[#allocation16_spill]] %s1896_s24  ;;  %s2032_s28 = sadd.s32 4294967295, %s1908_s27   ;;  %s1908_s27 = sphi %s2017_s27, %s2473_s27   ;;  %s1904_s26 = sphi %s2015_s26, %s2476_s26   ;;  %s1900_s25 = sphi %s2013_s25, %s2475_s25   ;;  %s1896_s24 = sphi %s2011_s24, %s2474_s24  }
   0xd   : > { %2452 = sst [smem:[#allocation17_spill]] %s1900_s25  ;;  %s1515_s29 = sadd.s32 4294967294, %s1908_s27  }
   0xe   : > { %2453 = sst [smem:[#allocation18_spill]] %s1904_s26  ;;  %s2036_s0 = sadd.s32 1, %s1908_s27  }
   0xf   : > { %2454 = sst [smem:[#allocation19_spill]] %s1908_s27  ;;  %s422_s30 = sadd.s32 1, %s1904_s26 }
  0x10   : > { %2455 = sst [smem:[#allocation20_spill]] %s2036_s0  ;;  %s419_s18 = ssub.s32 %s1908_s27, %s2036_s0 }
  0x11   : > { %p432_p0 = scmp.ne.s32.totalorder %s1904_s26, %s1900_s25  ;;  %p420_p1 = scmp.eq.s32.totalorder %s419_s18, 0 }
  0x12   : > { %p433_p2 = scmp.eq.s32.totalorder %s2032_s28, 1  ;;  %p438_p3 = scmp.ne.s32.totalorder %s1900_s25, %s1896_s24 }
  0x13   : > { %p439_p4 = scmp.eq.s32.totalorder %s1515_s29, 1  ;;  %p1516_p7 = scmp.ge.s32.totalorder %s1908_s27, 1 }
  0x14   : > { %s2047_s19 = scalar_select %p420_p1, %s1904_s26, %s422_s30  }
  0x15   : > { %p2049_p5 = por %p433_p2, %p432_p0  ;;  %p2053_p6 = por %p439_p4, %p438_p3 }
  0x16   : > { %2456 = sst [smem:[#allocation21_spill]] %s2047_s19  ;;  %p446_p8 = scmp.lt.s32.totalorder %s1908_s27, 3 }
  0x17   : > { %s2457_s1 = scalar_select %p2049_p5, 1, 0 }
  0x18   : > { %s2459_s20 = scalar_select %p2053_p6, 1, 0 }
  0x19   : > { %2458 = sst [smem:[#allocation22_spill]] %s2457_s1  ;;  %p1600_p9 = scmp.eq.s32.totalorder %s2032_s28, 0 }
  0x1a   : > { %2460 = sst [smem:[#allocation23_spill]] %s2459_s20  ;;  %p2060_p10 = pnand %p1516_p7, %p446_p8 }
  0x1b   : > { %s2462_s12 = sld [smem:[#allocation26_spill]]  ;;  %s1910_s30 = smov [#allocation5]  }
  0x1c   : > { %p1580_p11 = pneg %p2060_p10  ;;  %s489_s18 = sshll.u32 %s1910_s30, 4  ;;  %s490_s18 = int_to_ptr.vmem [resolvable:$true] %s489_s18 }
  0x1d   : > { %s2464_s15 = sld [smem:[#allocation27_spill]]  ;;  %s1911_s22 = smov 128  }
  0x1e   : > { %p2071_p12 = pnand %p1600_p9, %p1580_p11  ;;  %s1912_s23 = smov 8  }
  0x1f   : > { %s470_s17 = sshll.u32 %s2427_s9, 4  ;;  %s1914_s1 = smov [#allocation2]   ;;  %s471_s17 = int_to_ptr.hbm [resolvable:$true] %s470_s17 }
  0x20   : > { %s472_s25 = sshll.u32 %s1914_s1, 4  ;;  %s529_s27 = sshll.u32 %s2434_s16, 4  ;;  %s473_s25 = int_to_ptr.vmem [resolvable:$true] %s472_s25  ;;  %s530_s27 = int_to_ptr.hbm [resolvable:$true] %s529_s27 }
  0x21   : > { %s487_s29 = sshll.u32 %s2462_s12, 4  ;;  %s1913_s12 = smov [#allocation8]   ;;  %s488_s29 = int_to_ptr.hbm [resolvable:$true] %s487_s29 }
  0x22   : > { %1586 = dma.hbm_to_vmem [thread:$0]  (!%p2071_p12), %s488_s29, 512, %s490_s18, [#allocation6], %s1911_s22, %s1911_s22, %s1912_s23  }
  0x23   : > { %s517_s20 = sshll.u32 %s2464_s15, 4  ;;  %s519_s30 = sshll.u32 %s1913_s12, 4  ;;  %s518_s20 = int_to_ptr.hbm [resolvable:$true] %s517_s20  ;;  %s520_s30 = int_to_ptr.vmem [resolvable:$true] %s519_s30 }
  0x24   : > { %1592 = dma.hbm_to_vmem [thread:$0]  (!%p2071_p12), %s518_s20, 16, %s520_s30, [#allocation9]  }
  0x25   : > { %s502_s15 = sshll.u32 %s2431_s13, 4  ;;  %s1915_s12 = smov [#allocation7]   ;;  %s503_s15 = int_to_ptr.hbm [resolvable:$true] %s502_s15 }
  0x26   : > { %1583 = dma.hbm_to_vmem [thread:$0]  (!%p2071_p12), %s471_s17, 16, %s473_s25, [#allocation3]  }
  0x27   : > { %s504_s29 = sshll.u32 %s1915_s12, 4  ;;  %s1916_s20 = smov [#allocation10]   ;;  %s505_s29 = int_to_ptr.vmem [resolvable:$true] %s504_s29 }
  0x28   : > { %1589 = dma.hbm_to_vmem [thread:$0]  (!%p2071_p12), %s503_s15, 16, %s505_s29, [#allocation6]  }
  0x29   : > { %s531_s22 = sshll.u32 %s1916_s20, 4  ;;  %584 = sbr.rel (%p2060_p10) target bundleno = 838 (0x346), region = 88  ;;  %s532_s22 = int_to_ptr.vmem [resolvable:$true] %s531_s22 }
  0x2a   : > { %1595 = dma.hbm_to_vmem [thread:$0]  (!%p2071_p12), %s530_s27, 16, %s532_s22, [#allocation9]  }
  0x2e   : > { %1879 = dma.done.wait (%p1600_p9), [#allocation3], 16  }
  0x2f   : > { %1881 = vsyncadd (%p1600_p9), [#allocation3], 4294967280 }
  0x30   : > { %1883 = dma.done.wait (%p1600_p9), [#allocation6], 528  }
  0x31   : > { %1885 = vsyncadd (%p1600_p9), [#allocation6], 4294966768 }
  0x32   : > { %1887 = dma.done.wait (%p1600_p9), [#allocation9], 32  }
  0x33   : > { %1889 = vsyncadd (%p1600_p9), [#allocation9], 4294967264  ;;  %p677_p13 = scmp.lt.s32.totalorder %s2032_s28, 1  ;;  %v1917_v0 = vmov 0   ;;  %v738_v3 = vld [vmem:[%s2423_s5 + $0x18] sm:$0xff]  ;;  %v737_v4 = vld [vmem:[%s2423_s5 + $0x10] sm:$0xff] }
  0x34   : > { %1654 = vset.pattern.permute.xlu0 %v1917_v0  ;;  %1655 = vset.pattern.permute.xlu1 %v1917_v0  ;;  %v781_v5 = vld [vmem:[%s2424_s6 + $0x18] sm:$0xff]  ;;  %v780_v6 = vld [vmem:[%s2424_s6 + $0x10] sm:$0xff]  ;;  %v736_v7 = vld [vmem:[%s2423_s5 + $0x8] sm:$0xff]  ;;  %s2465_s0 = sld [smem:[#allocation25_spill]]  ;;  %vm739_vm0 = vcmask 261120   ;;  %vm849_vm1 = vcmask 1042432  }
  0x35   : > { %s678_s15 = scalar_select %p677_p13, %s2032_s28, 1  ;;  %1656 = vset.pattern.permute.xlu2 %v1917_v0  ;;  %761 = vmatpush.msra.mxu0 %v738_v3  ;;  %v735_v8 = vld [vmem:[%s2423_s5] sm:$0xff]  ;;  %v779_v9 = vld [vmem:[%s2424_s6 + $0x8] sm:$0xff]  ;;  %vm945_vm2 = vcmask 1046528   ;;  %vm970_vm3 = vcmask 1045504   ;;  %vm995_vm4 = vcmask 1044480  }
  0x36   : > { %803 = vmatpush.msra.mxu1 %v781_v5  ;;  %v778_v13 = vld [vmem:[%s2424_s6] sm:$0xff]  ;;  %vm895_vm5 = vcmask 1041408   ;;  %vm920_vm6 = vcmask 1040384   ;;  %vm1019_vm7 = vcmask 261123   ;;  %vm1029_vm8 = vcmask 256000   ;;  %s1557_s24 = smul.u32 24, %s2032_s28 }
  0x37   : > { %s2113_s17 = smul.u32 24, %s678_s15  ;;  %762 = vmatpush.msra.mxu0 %v737_v4  ;;  %s2466_s15 = sld [smem:[#allocation24_spill]]  ;;  %v1657_v30 = vld [vmem:[%s2425_s7] ss:$0 sm:$0xff] }
  0x38   : > { %804 = vmatpush.msra.mxu1 %v780_v6  ;;  %v845_v36 = vld [vmem:[%s2426_s8] sm:$0x7f] }
  0x39   : > { %s701_s1 = scalar_lea.vmem %s2422_s4, %s2113_s17  ;;  %s696_s20 = scalar_lea.vmem %s2421_s3, %s2113_s17  ;;  %763 = vmatpush.msra.mxu0 %v736_v7  ;;  %v2180_v40 = vperm.slane %v845_v36, 0  ;;  %v2182_v41 = vperm.slane %v845_v36, 1  ;;  %v2184_v44 = vperm.slane %v845_v36, 3  ;;  %v2187_v47 = vperm.slane %v845_v36, 2 }
  0x3a   : > { %v708_v1 = vld [vmem:[%s701_s1] sm:$0xff]  ;;  %v710_v2 = vld [vmem:[%s701_s1 + $0x10] sm:$0xff]  ;;  %v709_v10 = vld [vmem:[%s701_s1 + $0x8] sm:$0xff]  ;;  %805 = vmatpush.msra.mxu1 %v779_v9  ;;  %s686_s12 = scalar_lea.vmem %s2465_s0, %s2113_s17  ;;  %s691_s27 = scalar_lea.vmem %s2420_s2, %s2113_s17  ;;  %v2189_v48 = vperm.slane %v845_v36, 4  ;;  %v2197_v54 = vperm.slane %v845_v36, 5  ;;  %v2200_v58 = vperm.slane %v845_v36, 6 }
  0x3b   : > { %719 = vperm.xlu0 %1654, %v708_v1   ;;  %729 = vperm.xlu1 %1655, %v710_v2   ;;  %v705_v11 = vld [vmem:[%s696_s20] sm:$0xff]  ;;  %v712_v14 = vld [vmem:[%s686_s12 + $0x8] sm:$0xff]  ;;  %v713_v15 = vld [vmem:[%s686_s12 + $0x10] sm:$0xff] }
  0x3c   : > { %764 = vmatpush.msra.mxu0 %v735_v8  ;;  %v711_v12 = vld [vmem:[%s686_s12] sm:$0xff]  ;;  %806 = vmatpush.msra.mxu1 %v778_v13  ;;  %v706_v16 = vld [vmem:[%s696_s20 + $0x8] sm:$0xff]  ;;  %v707_v17 = vld [vmem:[%s696_s20 + $0x10] sm:$0xff]  ;;  %s2467_s12 = sld [smem:[#allocation17_spill]] }
  0x3d   : > { %1534 = vmatmul.msk.f32.vlgmr.msra.gmra.mxu0 %vm739_vm0, %v711_v12  ;;  %834 = vperm.xlu2 %1656, %v706_v16   ;;  %v714_v18 = vld [vmem:[%s691_s27] sm:$0xff]  ;;  %v715_v21 = vld [vmem:[%s691_s27 + $0x8] sm:$0xff]  ;;  %v716_v24 = vld [vmem:[%s691_s27 + $0x10] sm:$0xff]  ;;  %s681_s25 = scalar_lea.vmem %s2466_s15, %s2113_s17  ;;  %s2469_s15 = sld [smem:[#allocation28_spill]] }
  0x3e   : > { %v2165_v28 = vld [vmem:[%s681_s25] sm:$0xff]  ;;  %v2171_v34 = vld [vmem:[%s681_s25 + $0x8] sm:$0xff]  ;;  %v2194_v51 = vld [vmem:[%s681_s25 + $0x10] sm:$0xff] }
  0x42   : > { %s674_s29 = sand.u32 1, %s2467_s12  }
  0x43   : > { %724 = vperm.xlu0 %1654, %v709_v10   ;;  %829 = vperm.xlu1 %1655, %v705_v11   ;;  %s1555_s18 = smul.u32 24, %s674_s29  ;;  %s1351_s25 = scalar_lea.hbm %s2469_s15, %s1557_s24 }
  0x44   : > { %s1354_s21 = sshll.u32 %s1351_s25, 4  ;;  %s1340_s28 = scalar_lea.sflag [#allocation4], %s674_s29  ;;  %s1355_s21 = int_to_ptr.hbm [resolvable:$true] %s1354_s21 }
  0x45   : > { %1535 = vmatmul.msk.f32.gmra.mxu0 %vm739_vm0, %v712_v14  ;;  %839 = vperm.xlu2 %1656, %v707_v17   ;;  %s676_s1 = scalar_lea.vmem [#allocation11], %s1555_s18  ;;  %s1848_s23 = sshra.s32 %s1355_s21, 4  ;;  %s1849_s23 = int_to_ptr.hbm [resolvable:$true] %s1848_s23 }
  0x46   : > { %s1352_s19 = sshll.u32 %s676_s1, 4  ;;  %s1850_s30 = scalar_lea.hbm %s1849_s23, 24  ;;  %s1353_s19 = int_to_ptr.vmem [resolvable:$true] %s1352_s19 }
  0x47   : > { %p1851_p0 = scmp.ne.s32.totalorder %s1849_s23, %s1850_s30  ;;  %s1854_s0 = scalar_lea.hbm %s2469_s15, 48 }
  0x48   : > { %p1855_p3 = scmp.lt.s32.totalorder %s1849_s23, %s2469_s15  ;;  %p1856_p4 = scmp.lt.s32.totalorder %s1854_s0, %s1850_s30 }
  0x49   : > { %p1852_p1 = pnand %p1851_p0, %p2049_p5 }
  0x4a   : > { %p1857_p7 = por %p1856_p4, %p1855_p3 }
  0x4b   : > { %p1853_p2 = pneg %p1852_p1 }
  0x4d   : > { %1536 = vmatmul.msk.f32.gmra.mxu0 %vm739_vm0, %v713_v15  ;;  %p1858_p8 = pnand %p1857_p7, %p1853_p2 }
  0x97   : > { %v2192_v50 = vpop.permute.xlu2 %834 }
  0xad   : > { %v720_v19 = vpop.permute.xlu0 %719  ;;  %v730_v25 = vpop.permute.xlu1 %729 }
  0xae   : > { %v732_v20 = vmul.f32 %v720_v19, %v714_v18  ;;  %v734_v26 = vmul.f32 %v730_v25, %v716_v24  ;;  %v2220_v19 = vpop.permute.xlu2 %839 }
  0xb0   : > { %1537 = vmatmul.msk.f32.vlgmr.msra.gmra.mxu1 %vm739_vm0, %v732_v20 }
  0xb5   : > { %v725_v22 = vpop.permute.xlu0 %724  ;;  %v2176_v37 = vpop.permute.xlu1 %829 }
  0xb6   : > { %v733_v23 = vmul.f32 %v725_v22, %v715_v21 }
  0xb8   : > { %1538 = vmatmul.msk.f32.gmra.mxu1 %vm739_vm0, %v733_v23 }
  0xba   : > { %v766_v27 = vpop.f32.mrf.mxu0 }
  0xbb   : > { %v775_v29 = vadd.f32 %v766_v27, %v2165_v28 }
  0xc0   : > { %1539 = vmatmul.msk.f32.gmra.mxu1 %vm739_vm0, %v734_v26 }
  0xc2   : > { %v769_v32 = vpop.f32.mrf.mxu0 }
  0xc3   : > { %v776_v39 = vadd.f32 %v769_v32, %v2171_v34 }
  0xca   : > { %v772_v52 = vpop.f32.mrf.mxu0 }
  0xcb   : > { %v777_v60 = vadd.f32 %v772_v52, %v2194_v51 }
 0x12d   : > { %v808_v31 = vpop.f32.mrf.mxu1 }
 0x12e   : > { %v817_v33 = vadd.f32 %v808_v31, %v775_v29 }
 0x130   : > { %v824_v35 = vadd.f32 %v1657_v30, %v817_v33 }
 0x132   : > { %v842_v38 = vmul.f32 %v2176_v37, %v824_v35 }
 0x134   : > { %v850_v42 = vrot.slane %v842_v38, 5 }
 0x135   : > { %v811_v43 = vpop.f32.mrf.mxu1 }
 0x136   : > { %v859_v45 = vsel %vm849_vm1, 0.0, %v850_v42  ;;  %v818_v46 = vadd.f32 %v811_v43, %v776_v39 }
 0x137   : > { %v867_v49 = vmul.f32 %v2180_v40, %v859_v45  ;;  %v887_v53 = vmul.f32 %v2182_v41, %v859_v45  ;;  %v862_v56 = vmul.f32 %v2184_v44, %v859_v45  ;;  %v912_v61 = vmul.f32 %v2187_v47, %v859_v45 }
 0x138   : > { %v825_v55 = vadd.f32 %v1657_v30, %v818_v46  ;;  %v937_v62 = vmul.f32 %v2189_v48, %v859_v45  ;;  %v962_v1 = vmul.f32 %v2197_v54, %v859_v45  ;;  %v987_v5 = vmul.f32 %v2200_v58, %v859_v45  ;;  %v2238_v46 = vld [vmem:[#allocation2] ss:$0 sm:$0xff] }
 0x139   : > { %v873_v57 = vrot.slane %v867_v49, 5  ;;  %v896_v0 = vrot.slane %v887_v53, 6  ;;  %v921_v8 = vrot.slane %v912_v61, 7 }
 0x13a   : > { %v843_v59 = vmul.f32 %v2192_v50, %v825_v55  ;;  %v946_v9 = vrot.slane %v937_v62, 1  ;;  %v971_v13 = vrot.slane %v962_v1, 2  ;;  %v996_v29 = vrot.slane %v987_v5, 3 }
 0x13b   : > { %v882_v63 = vadd.f32 %v873_v57, %v862_v56 }
 0x13c   : > { %v851_v2 = vrot.slane %v843_v59, 5 }
 0x13d   : > { %v814_v3 = vpop.f32.mrf.mxu1  ;;  %v907_v4 = vadd.f32 %v896_v0, %v882_v63 }
 0x13e   : > { %v852_v6 = vsel %vm849_vm1, %v850_v42, %v851_v2  ;;  %v819_v7 = vadd.f32 %v814_v3, %v777_v60 }
 0x13f   : > { %v868_v10 = vmul.f32 %v2180_v40, %v852_v6  ;;  %v938_v11 = vmul.f32 %v2189_v48, %v852_v6  ;;  %v2212_v12 = vmul.f32 %v2197_v54, %v852_v6  ;;  %v932_v15 = vadd.f32 %v921_v8, %v907_v4 }
 0x140   : > { %v826_v14 = vadd.f32 %v1657_v30, %v819_v7  ;;  %v2215_v16 = vmul.f32 %v2200_v58, %v852_v6  ;;  %v2218_v17 = vmul.f32 %v2182_v41, %v852_v6  ;;  %v2224_v22 = vmul.f32 %v2187_v47, %v852_v6 }
 0x141   : > { %v874_v18 = vrot.slane %v868_v10, 5  ;;  %v947_v20 = vrot.slane %v938_v11, 1  ;;  %v972_v21 = vrot.slane %v2212_v12, 2  ;;  %v863_v25 = vmul.f32 %v2184_v44, %v852_v6 }
 0x142   : > { %v844_v23 = vmul.f32 %v2220_v19, %v826_v14  ;;  %v997_v24 = vrot.slane %v2215_v16, 3  ;;  %v897_v26 = vrot.slane %v2218_v17, 6  ;;  %v922_v31 = vrot.slane %v2224_v22, 7 }
 0x143   : > { %v948_v27 = vsel %vm945_vm2, %v946_v9, %v947_v20  ;;  %v875_v30 = vsel %vm849_vm1, %v873_v57, %v874_v18  ;;  %v973_v36 = vsel %vm970_vm3, %v971_v13, %v972_v21 }
 0x144   : > { %v853_v32 = vrot.slane %v844_v23, 5  ;;  %v957_v33 = vadd.f32 %v948_v27, %v932_v15  ;;  %v883_v35 = vadd.f32 %v875_v30, %v863_v25  ;;  %v998_v38 = vsel %vm995_vm4, %v996_v29, %v997_v24 }
 0x145   : > { %v898_v39 = vsel %vm895_vm5, %v896_v0, %v897_v26  ;;  %v923_v56 = vsel %vm920_vm6, %v921_v8, %v922_v31 }
 0x146   : > { %v854_v42 = vsel %vm849_vm1, %v851_v2, %v853_v32  ;;  %v860_v43 = vsel %vm849_vm1, %v853_v32, 0.0  ;;  %v982_v45 = vadd.f32 %v973_v36, %v957_v33  ;;  %v908_v49 = vadd.f32 %v898_v39, %v883_v35 }
 0x147   : > { %v865_v52 = vmul.f32 %v2184_v44, %v860_v43  ;;  %v869_v53 = vmul.f32 %v2180_v40, %v854_v42  ;;  %v890_v55 = vmul.f32 %v2182_v41, %v860_v43  ;;  %v915_v57 = vmul.f32 %v2187_v47, %v860_v43 }
 0x148   : > { %v940_v59 = vmul.f32 %v2189_v48, %v860_v43  ;;  %v1007_v60 = vadd.f32 %v998_v38, %v982_v45  ;;  %v939_v61 = vmul.f32 %v2189_v48, %v854_v42  ;;  %v933_v0 = vadd.f32 %v923_v56, %v908_v49 }
 0x149   : > { %v876_v62 = vrot.slane %v869_v53, 5  ;;  %v901_v63 = vrot.slane %v890_v55, 6  ;;  %v964_v1 = vmul.f32 %v2197_v54, %v854_v42  ;;  %v989_v3 = vmul.f32 %v2200_v58, %v854_v42 }
 0x14a   : > { %v2249_v2 = vadd.f32 %v2238_v46, %v1007_v60  ;;  %v949_v40 = vrot.slane %v939_v61, 1  ;;  %v864_v4 = vmul.f32 %v2184_v44, %v854_v42  ;;  %v889_v7 = vmul.f32 %v2182_v41, %v854_v42 }
 0x14b   : > { %v974_v5 = vrot.slane %v964_v1, 2  ;;  %v877_v6 = vsel %vm849_vm1, %v874_v18, %v876_v62  ;;  %v914_v48 = vmul.f32 %v2187_v47, %v854_v42  ;;  %v999_v11 = vrot.slane %v989_v3, 3 }
 0x14c   : > { %v1020_v8 = vsel %vm1019_vm7, %v2249_v2, 0.0  ;;  %v1037_v9 = vmul.f32 %v2249_v2, %v2249_v2  ;;  %v950_v10 = vsel %vm945_vm2, %v947_v20, %v949_v40  ;;  %v926_v12 = vrot.slane %v915_v57, 7 }
 0x14d   : > { %1021 = vadd.xlane.f32.xlu0 %v1020_v8  ;;  %v958_v13 = vadd.f32 %v950_v10, %v933_v0  ;;  %v884_v44 = vadd.f32 %v877_v6, %v864_v4  ;;  %v899_v14 = vrot.slane %v889_v7, 6  ;;  %v975_v41 = vsel %vm970_vm3, %v972_v21, %v974_v5 }
 0x14e   : > { %v1041_v15 = vsel %vm1019_vm7, %v1037_v9, 0.0  ;;  %v924_v16 = vrot.slane %v914_v48, 7  ;;  %v951_v47 = vrot.slane %v940_v59, 1  ;;  %v965_v22 = vmul.f32 %v2197_v54, %v860_v43 }
 0x14f   : > { %1042 = vadd.xlane.f32.xlu2 %v1041_v15  ;;  %v983_v17 = vadd.f32 %v975_v41, %v958_v13  ;;  %v900_v18 = vsel %vm895_vm5, %v897_v26, %v899_v14  ;;  %v990_v20 = vmul.f32 %v2200_v58, %v860_v43  ;;  %v1000_v23 = vsel %vm995_vm4, %v997_v24, %v999_v11  ;;  %v1139_v41 = vld [vmem:[#allocation5 + $0x10] sm:$0xff] }
 0x150   : > { %v909_v25 = vadd.f32 %v900_v18, %v884_v44  ;;  %v885_v27 = vadd.f32 %v876_v62, %v865_v52  ;;  %v925_v30 = vsel %vm920_vm6, %v922_v31, %v924_v16  ;;  %v976_v32 = vrot.slane %v965_v22, 2  ;;  %v1140_v44 = vld [vmem:[#allocation5 + $0x18] sm:$0xff] }
 0x151   : > { %v1008_v29 = vadd.f32 %v1000_v23, %v983_v17  ;;  %v902_v21 = vsel %vm895_vm5, %v899_v14, %v901_v63  ;;  %v952_v26 = vsel %vm945_vm2, %v949_v40, %v951_v47  ;;  %v1001_v54 = vrot.slane %v990_v20, 3  ;;  %1174 = vmatpush.msra.mxu2 %v1140_v44  ;;  %v1138_v20 = vld [vmem:[#allocation5 + $0x8] sm:$0xff] }
 0x152   : > { %v934_v33 = vadd.f32 %v925_v30, %v909_v25  ;;  %v910_v35 = vadd.f32 %v902_v21, %v885_v27  ;;  %v927_v58 = vsel %vm920_vm6, %v924_v16, %v926_v12  ;;  %v977_v42 = vsel %vm970_vm3, %v974_v5, %v976_v32 }
 0x153   : > { %v2270_v36 = vadd.f32 %v2238_v46, %v1008_v29  ;;  %v1002_v52 = vsel %vm995_vm4, %v999_v11, %v1001_v54  ;;  %1175 = vmatpush.msra.mxu2 %v1139_v41  ;;  %v1137_v29 = vld [vmem:[#allocation5] sm:$0xff]  ;;  %vm1287_vm7 = vcmask 523264  }
 0x154   : > { %v959_v38 = vadd.f32 %v952_v26, %v934_v33  ;;  %v935_v24 = vadd.f32 %v927_v58, %v910_v35 }
 0x155   : > { %v1023_v39 = vsel %vm739_vm0, %v2270_v36, 0.0  ;;  %v1038_v31 = vmul.f32 %v2270_v36, %v2270_v36  ;;  %1176 = vmatpush.msra.mxu2 %v1138_v20 }
 0x156   : > { %1024 = vadd.xlane.f32.xlu1 %v1023_v39  ;;  %v984_v43 = vadd.f32 %v977_v42, %v959_v38  ;;  %v960_v45 = vadd.f32 %v951_v47, %v935_v24 }
 0x157   : > { %v1044_v49 = vsel %vm739_vm0, %v1038_v31, 0.0  ;;  %1177 = vmatpush.msra.mxu2 %v1137_v29 }
 0x158   : > { %1045 = vadd.xlane.f32.xlu2 %v1044_v49  ;;  %v1009_v53 = vadd.f32 %v1002_v52, %v984_v43  ;;  %v985_v55 = vadd.f32 %v976_v32, %v960_v45 }
 0x15a   : > { %v2282_v56 = vadd.f32 %v2238_v46, %v1009_v53  ;;  %v1010_v57 = vadd.f32 %v1001_v54, %v985_v55 }
 0x15c   : > { %v1026_v59 = vsel %vm739_vm0, %v2282_v56, 0.0  ;;  %v1039_v60 = vmul.f32 %v2282_v56, %v2282_v56  ;;  %v2289_v61 = vadd.f32 %v2238_v46, %v1010_v57 }
 0x15d   : > { %1027 = vadd.xlane.f32.xlu0 %v1026_v59 }
 0x15e   : > { %v1047_v62 = vsel %vm739_vm0, %v1039_v60, 0.0  ;;  %v1030_v63 = vsel %vm1029_vm8, %v2289_v61, 0.0  ;;  %v1040_v0 = vmul.f32 %v2289_v61, %v2289_v61  ;;  %v1659_v60 = vld [vmem:[%s2428_s10] ss:$0 sm:$0xff] }
 0x15f   : > { %1048 = vadd.xlane.f32.xlu1 %v1047_v62 }
 0x160   : > { %1031 = vadd.xlane.f32.xlu2 %v1030_v63  ;;  %v1050_v1 = vsel %vm1029_vm8, %v1040_v0, 0.0 }
 0x165   : > { %1051 = vadd.xlane.f32.xlu0 %v1050_v1 }
 0x1c0   : > { %v1022_v40 = vpop.xlane.xlu0 %1021 }
 0x1c1   : > { %v1033_v3 = vmul.f32 0.03125, %v1022_v40 }
 0x1c2   : > { %v1043_v4 = vpop.xlane.xlu2 %1042 }
 0x1c3   : > { %v1057_v5 = vmul.f32 %v1033_v3, %v1033_v3  ;;  %v1053_v6 = vmul.f32 0.03125, %v1043_v4  ;;  %v1069_v52 = vsub.f32 %v2249_v2, %v1033_v3  ;;  %v1660_v4 = vld [vmem:[%s2429_s11] ss:$0 sm:$0xff] }
 0x1c5   : > { %v1061_v46 = vsub.f32 %v1053_v6, %v1057_v5 }
 0x1c7   : > { %v1065_v7 = vmax.f32 %v1061_v46, 0.0 }
 0x1c9   : > { %v1073_v48 = vadd.f32 1e-06, %v1065_v7  ;;  %v1025_v8 = vpop.xlane.xlu1 %1024 }
 0x1ca   : > { %v2295_v9 = vmul.f32 0.03125, %v1025_v8 }
 0x1cb   : > { %1664 = vrsqrt.f32 %v1073_v48  ;;  %v1046_v10 = vpop.xlane.xlu2 %1045  ;;  %vm1083_vm10 = vweird.f32 %v1073_v48 }
 0x1cc   : > { %v1058_v11 = vmul.f32 %v2295_v9, %v2295_v9  ;;  %v1054_v12 = vmul.f32 0.03125, %v1046_v10  ;;  %v1070_v40 = vsub.f32 %v2270_v36, %v2295_v9 }
 0x1ce   : > { %v1062_v13 = vsub.f32 %v1054_v12, %v1058_v11 }
 0x1d0   : > { %v1066_v14 = vmax.f32 %v1062_v13, 0.0  ;;  %v1028_v15 = vpop.xlane.xlu0 %1027 }
 0x1d1   : > { %v1665_v16 = vpop.eup %1664  ;;  %v2299_v47 = vmul.f32 0.03125, %v1028_v15 }
 0x1d2   : > { %v1078_v17 = vmul.f32 %v1665_v16, %v1073_v48  ;;  %v1074_v18 = vadd.f32 1e-06, %v1066_v14  ;;  %v1049_v22 = vpop.xlane.xlu1 %1048  ;;  %vm1084_vm9 = vweird.f32 %v1665_v16 }
 0x1d3   : > { %v1059_v23 = vmul.f32 %v2299_v47, %v2299_v47  ;;  %v1055_v25 = vmul.f32 0.03125, %v1049_v22  ;;  %v1032_v27 = vpop.xlane.xlu2 %1031  ;;  %vm1085_vm11 = vmor %vm1083_vm10, %vm1084_vm9  ;;  %v1071_v36 = vsub.f32 %v2282_v56, %v2299_v47 }
 0x1d4   : > { %v1079_v30 = vmul.f32 %v1665_v16, %v1078_v17  ;;  %1666 = vrsqrt.f32 %v1074_v18  ;;  %v2303_v33 = vmul.f32 0.03125, %v1032_v27  ;;  %vm1093_vm13 = vweird.f32 %v1074_v18 }
 0x1d5   : > { %v1063_v32 = vsub.f32 %v1055_v25, %v1059_v23 }
 0x1d6   : > { %v1080_v21 = vmul.f32 0.5, %v1079_v30  ;;  %v1060_v31 = vmul.f32 %v2303_v33, %v2303_v33  ;;  %v1072_v56 = vsub.f32 %v2289_v61, %v2303_v33 }
 0x1d7   : > { %v1067_v35 = vmax.f32 %v1063_v32, 0.0 }
 0x1d8   : > { %v1081_v26 = vsub.f32 1.5, %v1080_v21  ;;  %v1052_v54 = vpop.xlane.xlu0 %1051 }
 0x1d9   : > { %v1075_v58 = vadd.f32 1e-06, %v1067_v35  ;;  %v1056_v38 = vmul.f32 0.03125, %v1052_v54 }
 0x1da   : > { %v1667_v24 = vpop.eup %1666  ;;  %v1082_v39 = vmul.f32 %v1665_v16, %v1081_v26  ;;  %v1661_v26 = vld [vmem:[#allocation7] ss:$0 sm:$0xff] }
 0x1db   : > { %v1088_v42 = vmul.f32 %v1667_v24, %v1074_v18  ;;  %1668 = vrsqrt.f32 %v1075_v58  ;;  %v1064_v43 = vsub.f32 %v1056_v38, %v1060_v31  ;;  %vm1094_vm12 = vweird.f32 %v1667_v24  ;;  %v1282_v38 = vld [vmem:[%s2432_s14 + $0x38] sm:$0xff] }
 0x1dc   : > { %v1086_v45 = vsel %vm1085_vm11, %v1665_v16, %v1082_v39  ;;  %vm1095_vm14 = vmor %vm1093_vm13, %vm1094_vm12  ;;  %vm1103_vm1 = vweird.f32 %v1075_v58  ;;  %1305 = vmatpush.msra.mxu3 %v1282_v38 }
 0x1dd   : > { %v1089_v49 = vmul.f32 %v1667_v24, %v1088_v42  ;;  %v1068_v53 = vmax.f32 %v1064_v43, 0.0  ;;  %v1117_v59 = vmul.f32 %v1086_v45, %v1069_v52  ;;  %v1280_v42 = vld [vmem:[%s2432_s14 + $0x28] sm:$0xff] }
 0x1df   : > { %v1090_v55 = vmul.f32 0.5, %v1089_v49  ;;  %v1076_v57 = vadd.f32 1e-06, %v1068_v53  ;;  %v1125_v3 = vmul.f32 %v1659_v60, %v1117_v59  ;;  %v1279_v49 = vld [vmem:[%s2432_s14 + $0x20] sm:$0xff]  ;;  %v1278_v53 = vld [vmem:[%s2432_s14 + $0x18] sm:$0xff] }
 0x1e1   : > { %v1669_v62 = vpop.eup %1668  ;;  %v1091_v63 = vsub.f32 1.5, %v1090_v55  ;;  %1670 = vrsqrt.f32 %v1076_v57  ;;  %v1133_v10 = vadd.f32 %v1660_v4, %v1125_v3  ;;  %vm1113_vm5 = vweird.f32 %v1076_v57 }
 0x1e2   : > { %v1098_v0 = vmul.f32 %v1669_v62, %v1075_v58  ;;  %vm1104_vm15 = vweird.f32 %v1669_v62 }
 0x1e3   : > { %v1092_v1 = vmul.f32 %v1667_v24, %v1091_v63  ;;  %vm1105_vm2 = vmor %vm1103_vm1, %vm1104_vm15  ;;  %v1149_v14 = vrot.slane %v1133_v10, 3 }
 0x1e4   : > { %v1099_v2 = vmul.f32 %v1669_v62, %v1098_v0 }
 0x1e5   : > { %v1096_v5 = vsel %vm1095_vm14, %v1667_v24, %v1092_v1  ;;  %v1281_v24 = vld [vmem:[%s2432_s14 + $0x30] sm:$0xff] }
 0x1e6   : > { %v1100_v6 = vmul.f32 0.5, %v1099_v2  ;;  %v1118_v46 = vmul.f32 %v1096_v5, %v1070_v40  ;;  %1306 = vmatpush.msra.mxu3 %v1281_v24  ;;  %v1275_v2 = vld [vmem:[%s2432_s14] sm:$0xff] }
 0x1e7   : > { %v1671_v7 = vpop.eup %1670 }
 0x1e8   : > { %v1101_v48 = vsub.f32 1.5, %v1100_v6  ;;  %v1126_v8 = vmul.f32 %v1659_v60, %v1118_v46  ;;  %v1108_v11 = vmul.f32 %v1671_v7, %v1076_v57  ;;  %vm1114_vm3 = vweird.f32 %v1671_v7  ;;  %1307 = vmatpush.msra.mxu3 %v1280_v42  ;;  %v1277_v57 = vld [vmem:[%s2432_s14 + $0x10] sm:$0xff] }
 0x1e9   : > { %vm1115_vm6 = vmor %vm1113_vm5, %vm1114_vm3 }
 0x1ea   : > { %v1102_v12 = vmul.f32 %v1669_v62, %v1101_v48  ;;  %v1134_v13 = vadd.f32 %v1660_v4, %v1126_v8  ;;  %v1109_v9 = vmul.f32 %v1671_v7, %v1108_v11  ;;  %1308 = vmatpush.msra.mxu3 %v1279_v49 }
 0x1ec   : > { %v1106_v44 = vsel %vm1105_vm2, %v1669_v62, %v1102_v12  ;;  %v1150_v15 = vrot.slane %v1134_v13, 3  ;;  %v1110_v41 = vmul.f32 0.5, %v1109_v9  ;;  %1309 = vmatpush.msra.mxu3 %v1278_v53  ;;  %v1276_v62 = vld [vmem:[%s2432_s14 + $0x8] sm:$0xff] }
 0x1ed   : > { %v1119_v16 = vmul.f32 %v1106_v44, %v1071_v36 }
 0x1ee   : > { %v1151_v17 = vsel %vm995_vm4, %v1149_v14, %v1150_v15  ;;  %v1111_v18 = vsub.f32 1.5, %v1110_v41  ;;  %1310 = vmatpush.msra.mxu3 %v1277_v57 }
 0x1ef   : > { %1540 = vmatmul.msk.f32.vlgmr.msra.gmra.mxu2 %vm739_vm0, %v1151_v17  ;;  %v1127_v22 = vmul.f32 %v1659_v60, %v1119_v16 }
 0x1f0   : > { %v1112_v20 = vmul.f32 %v1671_v7, %v1111_v18  ;;  %1311 = vmatpush.msra.mxu3 %v1276_v62 }
 0x1f1   : > { %v1135_v23 = vadd.f32 %v1660_v4, %v1127_v22 }
 0x1f2   : > { %v1116_v47 = vsel %vm1115_vm6, %v1671_v7, %v1112_v20  ;;  %1312 = vmatpush.msra.mxu3 %v1275_v2 }
 0x1f3   : > { %v1152_v25 = vrot.slane %v1135_v23, 3  ;;  %v1120_v27 = vmul.f32 %v1116_v47, %v1072_v56 }
 0x1f5   : > { %v1153_v29 = vsel %vm995_vm4, %v1150_v15, %v1152_v25  ;;  %v1128_v30 = vmul.f32 %v1659_v60, %v1120_v27 }
 0x1f7   : > { %1541 = vmatmul.msk.f32.gmra.mxu2 %vm739_vm0, %v1153_v29  ;;  %v1136_v32 = vadd.f32 %v1660_v4, %v1128_v30 }
 0x1f9   : > { %v1154_v21 = vrot.slane %v1136_v32, 3 }
 0x1fb   : > { %v1155_v35 = vsel %vm995_vm4, %v1152_v25, %v1154_v21 }
 0x1ff   : > { %1542 = vmatmul.msk.f32.gmra.mxu2 %vm739_vm0, %v1155_v35 }
 0x272   : > { %v1179_v54 = vpop.f32.mrf.mxu2 }
 0x273   : > { %v2326_v58 = vadd.f32 %v1661_v26, %v1179_v54 }
 0x275   : > { %v2329_v61 = vmul.f32 0.70710677, %v2326_v58 }
 0x277   : > { %v1197_v33 = vand.u32 2147483647, %v2329_v61  ;;  %vm1191_vm4 = vcmp.ge.f32.partialorder %v2329_v61, 0.0 }
 0x279   : > { %v1200_v39 = vmul.f32 0.3275911, %v1197_v33  ;;  %v1245_v46 = vsub.f32 0.0, %v1197_v33 }
 0x27a   : > { %v1182_v31 = vpop.f32.mrf.mxu2 }
 0x27b   : > { %v1203_v43 = vadd.f32 1.0, %v1200_v39  ;;  %v2341_v45 = vadd.f32 %v1661_v26, %v1182_v31  ;;  %v1248_v13 = vmul.f32 %v1245_v46, %v1197_v33 }
 0x27d   : > { %1672 = vrcp.f32 %v1203_v43  ;;  %v2347_v52 = vmul.f32 0.70710677, %v2341_v45  ;;  %v1251_v15 = vmul.f32 1.442695, %v1248_v13 }
 0x27f   : > { %v1198_v55 = vand.u32 2147483647, %v2347_v52  ;;  %vm1192_vm8 = vcmp.ge.f32.partialorder %v2347_v52, 0.0 }
 0x281   : > { %v1201_v59 = vmul.f32 0.3275911, %v1198_v55  ;;  %v1246_v41 = vsub.f32 0.0, %v1198_v55 }
 0x282   : > { %v1185_v60 = vpop.f32.mrf.mxu2 }
 0x283   : > { %v1673_v63 = vpop.eup %1672  ;;  %v1204_v0 = vadd.f32 1.0, %v1201_v59  ;;  %v2359_v1 = vadd.f32 %v1661_v26, %v1185_v60  ;;  %v1249_v56 = vmul.f32 %v1246_v41, %v1198_v55  ;;  %v1918_v55 = vmov -1.0  }
 0x284   : > { %v1209_v40 = vmul.f32 %v1673_v63, %v1203_v43  ;;  %v1194_v57 = vsel %vm1191_vm4, 1.0, %v1918_v55 }
 0x285   : > { %1674 = vrcp.f32 %v1204_v0  ;;  %v2365_v3 = vmul.f32 0.70710677, %v2359_v1  ;;  %v1253_v21 = vmul.f32 1.442695, %v1249_v56  ;;  %v1268_v41 = vmul.f32 0.5, %v2359_v1 }
 0x286   : > { %v1212_v4 = vsub.f32 2.0, %v1209_v40 }
 0x287   : > { %v1199_v5 = vand.u32 2147483647, %v2365_v3  ;;  %vm1193_vm9 = vcmp.ge.f32.partialorder %v2365_v3, 0.0 }
 0x288   : > { %v1215_v6 = vmul.f32 %v1673_v63, %v1212_v4 }
 0x289   : > { %v1202_v7 = vmul.f32 0.3275911, %v1199_v5  ;;  %v1247_v35 = vsub.f32 0.0, %v1199_v5 }
 0x28a   : > { %v1218_v48 = vmul.f32 1.0614054, %v1215_v6 }
 0x28b   : > { %v1675_v8 = vpop.eup %1674  ;;  %v1205_v10 = vadd.f32 1.0, %v1202_v7  ;;  %v1250_v42 = vmul.f32 %v1247_v35, %v1199_v5 }
 0x28c   : > { %v1210_v11 = vmul.f32 %v1675_v8, %v1204_v0  ;;  %v1543_v12 = vadd.f32 -1.4531521, %v1218_v48  ;;  %v1266_v0 = vmul.f32 0.5, %v2326_v58  ;;  %v1267_v58 = vmul.f32 0.5, %v2341_v45  ;;  %v1662_v45 = vld [vmem:[#allocation8] ss:$0 sm:$0xff] }
 0x28d   : > { %1676 = vrcp.f32 %v1205_v10  ;;  %v1255_v63 = vmul.f32 1.442695, %v1250_v42 }
 0x28e   : > { %v1213_v36 = vsub.f32 2.0, %v1210_v11  ;;  %v1224_v9 = vmul.f32 %v1543_v12, %v1215_v6  ;;  %1678 = vpow2.f32 %v1251_v15 }
 0x28f   : > { %1680 = vpow2.f32 %v1253_v21 }
 0x290   : > { %v1216_v44 = vmul.f32 %v1675_v8, %v1213_v36  ;;  %v1227_v14 = vadd.f32 1.4214138, %v1224_v9  ;;  %1682 = vpow2.f32 %v1255_v63  ;;  %v1195_v8 = vsel %vm1192_vm8, 1.0, %v1918_v55 }
 0x292   : > { %v1230_v16 = vmul.f32 %v1227_v14, %v1215_v6  ;;  %v1219_v17 = vmul.f32 1.0614054, %v1216_v44  ;;  %v1196_v14 = vsel %vm1193_vm9, 1.0, %v1918_v55 }
 0x293   : > { %v1677_v18 = vpop.eup %1676 }
 0x294   : > { %v1211_v22 = vmul.f32 %v1677_v18, %v1205_v10  ;;  %v1546_v20 = vadd.f32 -0.28449672, %v1230_v16  ;;  %v1544_v23 = vadd.f32 -1.4531521, %v1219_v17  ;;  %v1679_v38 = vpop.eup %1678 }
 0x295   : > { %v1681_v61 = vpop.eup %1680 }
 0x296   : > { %v1214_v47 = vsub.f32 2.0, %v1211_v22  ;;  %v1236_v25 = vmul.f32 %v1546_v20, %v1215_v6  ;;  %v1225_v27 = vmul.f32 %v1544_v23, %v1216_v44  ;;  %v1683_v36 = vpop.eup %1682 }
 0x298   : > { %v1217_v29 = vmul.f32 %v1677_v18, %v1214_v47  ;;  %v1239_v30 = vadd.f32 0.2548296, %v1236_v25  ;;  %v1228_v32 = vadd.f32 1.4214138, %v1225_v27  ;;  %v1663_v18 = vld [vmem:[#allocation10] ss:$0 sm:$0xff] }
 0x29a   : > { %v1242_v26 = vmul.f32 %v1239_v30, %v1215_v6  ;;  %v1231_v54 = vmul.f32 %v1228_v32, %v1216_v44  ;;  %v1220_v33 = vmul.f32 1.0614054, %v1217_v29 }
 0x29c   : > { %v1257_v24 = vmul.f32 %v1679_v38, %v1242_v26  ;;  %v1547_v39 = vadd.f32 -0.28449672, %v1231_v54  ;;  %v1545_v31 = vadd.f32 -1.4531521, %v1220_v33 }
 0x29e   : > { %v1260_v43 = vsub.f32 1.0, %v1257_v24  ;;  %v1237_v49 = vmul.f32 %v1547_v39, %v1216_v44  ;;  %v1226_v53 = vmul.f32 %v1545_v31, %v1217_v29 }
 0x2a0   : > { %v1263_v59 = vmul.f32 %v1260_v43, %v1194_v57  ;;  %v1240_v60 = vadd.f32 0.2548296, %v1237_v49  ;;  %v1229_v62 = vadd.f32 1.4214138, %v1226_v53 }
 0x2a2   : > { %v1269_v40 = vadd.f32 1.0, %v1263_v59  ;;  %v1243_v2 = vmul.f32 %v1240_v60, %v1216_v44  ;;  %v1232_v4 = vmul.f32 %v1229_v62, %v1217_v29 }
 0x2a4   : > { %v1272_v6 = vmul.f32 %v1269_v40, %v1266_v0  ;;  %v1258_v5 = vmul.f32 %v1681_v61, %v1243_v2  ;;  %v1548_v46 = vadd.f32 -0.28449672, %v1232_v4 }
 0x2a6   : > { %1549 = vmatmul.msk.f32.vlgmr.msra.gmra.mxu3 %vm1287_vm7, %v1272_v6  ;;  %v1261_v7 = vsub.f32 1.0, %v1258_v5  ;;  %v1238_v48 = vmul.f32 %v1548_v46, %v1217_v29 }
 0x2a8   : > { %v1264_v10 = vmul.f32 %v1261_v7, %v1195_v8  ;;  %v1241_v11 = vadd.f32 0.2548296, %v1238_v48 }
 0x2aa   : > { %v1270_v12 = vadd.f32 1.0, %v1264_v10  ;;  %v1244_v13 = vmul.f32 %v1241_v11, %v1217_v29 }
 0x2ac   : > { %v1273_v52 = vmul.f32 %v1270_v12, %v1267_v58  ;;  %v1259_v9 = vmul.f32 %v1683_v36, %v1244_v13 }
 0x2ae   : > { %1550 = vmatmul.msk.f32.gmra.mxu3 %vm1287_vm7, %v1273_v52  ;;  %v1262_v44 = vsub.f32 1.0, %v1259_v9 }
 0x2b0   : > { %v1265_v15 = vmul.f32 %v1262_v44, %v1196_v14 }
 0x2b2   : > { %v1271_v16 = vadd.f32 1.0, %v1265_v15 }
 0x2b4   : > { %v1274_v17 = vmul.f32 %v1271_v16, %v1268_v41 }
 0x2b6   : > { %1551 = vmatmul.msk.f32.gmra.mxu3 %vm1287_vm7, %v1274_v17 }
 0x329   : > { %v1314_v22 = vpop.f32.mrf.mxu3 }
 0x32a   : > { %v1315_v20 = vadd.f32 %v1662_v45, %v1314_v22 }
 0x32c   : > { %v1327_v3 = vmul.f32 %v1663_v18, %v1315_v20 }
 0x32e   : > { %v1330_v23 = vadd.f32 %v1327_v3, %v2165_v28 }
 0x330   : > { %v1333_v56 = vmul.f32 %v1330_v23, %v2176_v37 }
 0x331   : > { %v1317_v47 = vpop.f32.mrf.mxu3 }
 0x332   : > { %1336 = vst.msk [vmem:[%s676_s1] sm:$0xff] %vm739_vm0, %v1333_v56  ;;  %v1318_v1 = vadd.f32 %v1662_v45, %v1317_v47 }
 0x334   : > { %v1328_v25 = vmul.f32 %v1663_v18, %v1318_v1 }
 0x336   : > { %v1331_v27 = vadd.f32 %v1328_v25, %v2171_v34 }
 0x338   : > { %v1334_v29 = vmul.f32 %v1331_v27, %v2192_v50 }
 0x339   : > { %v1320_v30 = vpop.f32.mrf.mxu3 }
 0x33a   : > { %1337 = vst.msk [vmem:[%s676_s1 + $0x8] sm:$0xff] %vm739_vm0, %v1334_v29  ;;  %v1321_v32 = vadd.f32 %v1662_v45, %v1320_v30 }
 0x33c   : > { %v1329_v28 = vmul.f32 %v1663_v18, %v1321_v32 }
 0x33e   : > { %v1332_v37 = vadd.f32 %v1329_v28, %v2194_v51 }
 0x340   : > { %v1335_v34 = vmul.f32 %v1332_v37, %v2220_v19 }
 0x342   : > { %1338 = vst.msk [vmem:[%s676_s1 + $0x10] sm:$0xff] %vm739_vm0, %v1335_v34 }
 0x343   : > { %1861 = shalt.err (!%p1858_p8)
}
 0x344   : > { %s1919_s29 = smov 128   ;;  %s1920_s1 = smov 8  }
 0x345   : > { %1578 = dma.vmem_to_hbm [thread:$0]  (%p2049_p5), %s1353_s19, 384, %s1355_s21, %s1340_s28, %s1919_s29, %s1919_s29, %s1920_s1  }
 0x346 PF: > { %s2470_s24 = sld [smem:[#allocation19_spill]] }
 0x347   : > { %s2471_s20 = sld [smem:[#allocation16_spill]] }
 0x34c   : > { %p1610_p9 = scmp.ge.s32.totalorder %s2470_s24, 2 }
 0x34d   : > { %s1369_s25 = sand.u32 1, %s2471_s20  }
 0x34e   : > { %p1597_p10 = pnand %p1610_p9, %p2053_p6  ;;  %s1370_s17 = scalar_lea.sflag [#allocation4], %s1369_s25 }
 0x350   : > { %p1598_p11 = pneg %p1597_p10 }
 0x352   : > { %1891 = dma.done.wait (%p1598_p11), %s1370_s17, 384  }
 0x353   : > { %1893 = vsyncadd (%p1598_p11), %s1370_s17, 4294966912  ;;  %s2473_s27 = sld [smem:[#allocation20_spill]] }
 0x354   : > { %s2474_s24 = sld [smem:[#allocation17_spill]] }
 0x355   : > { %s2475_s25 = sld [smem:[#allocation18_spill]] }
 0x356   : > { %s2476_s26 = sld [smem:[#allocation21_spill]] }
 0x359   : > { %p30_p12 = scmp.ge.s32.totalorder %s2473_s27, 4  }
 0x35b   :  { %32 = sbr.rel (!%p30_p12) target bundleno = 12 (0xc), region = 156 }
 0x360   :  { %1376 = vsyncpa [#allocation3], 1 }
 0x361   :  { %1378 = vsyncpa [#allocation3 + $0x1], 1 }
 0x362   :  { %1379 = vsyncpa [#allocation6], 1 }
 0x363   :  { %1380 = vsyncpa [#allocation9], 1 }
 0x364   :  { %1381 = vsyncpa [#allocation4], 1 }
 0x365   :  { %1383 = vsyncpa [#allocation4 + $0x1], 1 }

</bundles_post_ra>
